<compile_context>
chip_gen: v7x
topology: tpu7x:2x2x1
jax: 0.10.0
libtpu: 0.0.40
codegen_flags: <defaults>
</compile_context>

<pallas_src>
import jax
import jax.numpy as jnp
from jax.experimental import pallas as pl
from jax.experimental.pallas import tpu as pltpu


def luong_decoder_kernel(emb_ref, h0_ref, enc_ref,
                         w_ih_ref, w_hh_ref, w_cat_ref, b_ref,
                         w_out_ref, b_out_ref,
                         out_ref, hid_ref,
                         h_sc, cc_sc):
    t = pl.program_id(0)          # decode step
    j = pl.program_id(1)          # vocab tile
    n_t = pl.num_programs(0)
    n_j = pl.num_programs(1)
    B, H = h_sc.shape
    TN = w_out_ref.shape[1]

    # ---- load the initial hidden state once ----
    @pl.when(jnp.logical_and(t == 0, j == 0))
    def _init():
        h_sc[...] = h0_ref[...]

    # ---- per-step part (vocab-tile invariant): GRU cell + Luong dot attention + concat ----
    @pl.when(j == 0)
    def _gru_attn_concat():
        x = emb_ref[0]                                                # (B, H)  bf16
        h = h_sc[...]                                                 # (B, H)  f32

        # Two accumulating GRU matmuls (gate order r, z, n) — no zero blocks, no concat.
        gi = jnp.dot(x, w_ih_ref[...],
                     preferred_element_type=jnp.float32) + b_ref[:, 0:3 * H]
        gh = jnp.dot(h.astype(jnp.bfloat16), w_hh_ref[...],
                     preferred_element_type=jnp.float32) + b_ref[:, 3 * H:6 * H]
        r = jax.nn.sigmoid(gi[:, 0:H] + gh[:, 0:H])
        z = jax.nn.sigmoid(gi[:, H:2 * H] + gh[:, H:2 * H])
        n = jnp.tanh(gi[:, 2 * H:3 * H] + r * gh[:, 2 * H:3 * H])
        h_new = (1.0 - z) * n + z * h                                 # (B, H) f32

        # Luong "dot" attention as MXU batched matmuls on the (B, S, H) layout.
        enc = enc_ref[...]                                            # (B, S, H) bf16
        q = h_new.astype(jnp.bfloat16).reshape(B, 1, H)               # (B, 1, H)
        scores = jnp.einsum('bqh,bkh->bqk', q, enc,
                            preferred_element_type=jnp.float32)       # (B, 1, S)
        m = jnp.max(scores, axis=-1, keepdims=True)
        p = jnp.exp(scores - m)
        inv = pl.reciprocal(jnp.sum(p, axis=-1, keepdims=True), approx=True)   # EUP
        attn = p * inv                                                # softmax over seq
        ctx = jnp.einsum('bqk,bkh->bqh', attn.astype(jnp.bfloat16), enc,
                         preferred_element_type=jnp.float32)          # (B, 1, H)
        context = ctx.reshape(B, H)

        # concat Linear + tanh.
        hc = jnp.concatenate([h_new, context], axis=1).astype(jnp.bfloat16)
        cc = jnp.tanh(jnp.dot(hc, w_cat_ref[...],
                              preferred_element_type=jnp.float32) + b_ref[:, 6 * H:7 * H])
        cc_sc[...] = cc.astype(jnp.bfloat16)                          # carried across vocab tiles
        h_sc[...] = h_new                                             # carried across decode steps

    # ---- per-vocab-tile output projection into the resident (B, O) block of step t ----
    logits = jnp.dot(cc_sc[...], w_out_ref[...],
                     preferred_element_type=jnp.float32) + b_out_ref[...]
    col = pl.multiple_of(j * TN, TN)
    out_ref[0, :, pl.ds(col, TN)] = logits

    # ---- final softmax over the full vocab, once per step, at the last vocab tile ----
    @pl.when(j == n_j - 1)
    def _softmax():
        full = out_ref[0]                                             # (B, O) f32 logits
        lm = jnp.max(full, axis=-1, keepdims=True)
        e = jnp.exp(full - lm)
        inv = pl.reciprocal(jnp.sum(e, axis=-1, keepdims=True), approx=False)
        out_ref[0] = e * inv

    # ---- write the final hidden state once, at the very last grid step ----
    @pl.when(jnp.logical_and(t == n_t - 1, j == n_j - 1))
    def _store_hidden():
        hid_ref[...] = h_sc[...]


def prepare_encoder(encoder_outputs):
    """(S, B, H) f32 -> (B, S, H) bf16.  Call ONCE per sequence, outside the decode loop."""
    return jnp.transpose(encoder_outputs, (1, 0, 2)).astype(jnp.bfloat16)


def luong_attn_decoder_fused(tokens, last_hidden, enc_bsh, params, *, vocab_tile=2048):
    """Run T decode steps (teacher-forced tokens) in one pallas_call.

    tokens: (T, B) int32; last_hidden: (1, B, H) f32; enc_bsh: (B, S, H) bf16.
    Returns (probs (T, B, O), hidden (1, B, H)).
    """
    T, B = tokens.shape
    S = enc_bsh.shape[1]
    H = last_hidden.shape[2]
    O = params["w_out"].shape[1]

    tn = O if O <= vocab_tile else vocab_tile
    assert O % tn == 0, "output size must be a multiple of the vocab tile"
    n_tiles = O // tn

    # Embedding gather for all T tokens at once (+ identity dropout).
    embedded = jnp.take(params["embedding"], tokens.reshape(-1), axis=0).reshape(T, B, H)
    h0 = last_hidden[0].astype(jnp.float32)                            # (B, H) f32

    grid_spec = pltpu.PrefetchScalarGridSpec(
        num_scalar_prefetch=0,
        grid=(T, n_tiles),
        in_specs=[
            pl.BlockSpec((1, B, H), lambda t, j: (t, 0, 0)),           # embedded (pipelined over t)
            pl.BlockSpec((B, H), lambda t, j: (0, 0)),                 # h0        (resident)
            pl.BlockSpec((B, S, H), lambda t, j: (0, 0, 0)),           # encoder   (resident)
            pl.BlockSpec((H, 3 * H), lambda t, j: (0, 0)),             # w_ih      (resident)
            pl.BlockSpec((H, 3 * H), lambda t, j: (0, 0)),             # w_hh      (resident)
            pl.BlockSpec((2 * H, H), lambda t, j: (0, 0)),             # w_cat     (resident)
            pl.BlockSpec((1, 7 * H), lambda t, j: (0, 0)),             # packed biases (resident)
            pl.BlockSpec((H, tn), lambda t, j: (0, j)),                # w_out vocab tile
            pl.BlockSpec((1, tn), lambda t, j: (0, j)),                # b_out vocab tile
        ],
        out_specs=[
            pl.BlockSpec((1, B, O), lambda t, j: (t, 0, 0)),           # per-step probs (resident over j)
            pl.BlockSpec((B, H), lambda t, j: (0, 0)),                 # final hidden
        ],
        scratch_shapes=[pltpu.VMEM((B, H), jnp.float32),               # hidden carry
                        pltpu.VMEM((B, H), jnp.bfloat16)],             # concat-tanh activations
    )

    probs, h_new = pl.pallas_call(
        luong_decoder_kernel,
        grid_spec=grid_spec,
        out_shape=(jax.ShapeDtypeStruct((T, B, O), jnp.float32),
                   jax.ShapeDtypeStruct((B, H), jnp.float32)),
        input_output_aliases={1: 1},    # h0 buffer reused for the final hidden state
        compiler_params=pltpu.CompilerParams(
            # Both axes are sequential: h carries over t, cc/out carry over j.
            dimension_semantics=("arbitrary", "arbitrary"),
            # 48 MiB: within v7x's 64 MiB physical VMEM, headroom for big vocab tiles on v5e/v6e.
            vmem_limit_bytes=48 * 1024 * 1024,
        ),
    )(embedded, h0, enc_bsh,
      params["w_ih"], params["w_hh"], params["w_cat"], params["b_small"],
      params["w_out"], params["b_out"])

    return probs, h_new[None, :, :]


def luong_attn_decoder_step(input_step, last_hidden, encoder_outputs, params, *,
                            vocab_tile=2048):
    """Single decode step (the PyTorch module's forward). input_step: (1, B) int32;
    last_hidden: (1, B, H) f32; encoder_outputs: (S, B, H) f32."""
    # NOTE: when decoding many tokens, call prepare_encoder() once and use
    # luong_attn_decoder_fused() directly to amortize it (and the kernel launch).
    enc_bsh = prepare_encoder(encoder_outputs)
    probs, h_new = luong_attn_decoder_fused(input_step, last_hidden, enc_bsh, params,
                                            vocab_tile=vocab_tile)
    return probs[0], h_new                                            # (B, O), (1, B, H)


def init_params(key, vocab_size, hidden_size, output_size):
    ks = jax.random.split(key, 10)
    s = 0.1
    H = hidden_size
    f32 = jnp.float32

    # PyTorch-style GRU weights (gate order r, z, n), stored (in, out).
    w_ih = s * jax.random.normal(ks[1], (H, 3 * H), f32)
    w_hh = s * jax.random.normal(ks[2], (H, 3 * H), f32)
    b_ih = s * jax.random.normal(ks[3], (3 * H,), f32)
    b_hh = s * jax.random.normal(ks[4], (3 * H,), f32)
    w_concat = s * jax.random.normal(ks[5], (2 * H, H), f32)   # rows [:H]=rnn_out, [H:]=context
    b_concat = s * jax.random.normal(ks[6], (H,), f32)
    w_out = s * jax.random.normal(ks[7], (H, output_size), f32)
    b_out = s * jax.random.normal(ks[8], (output_size,), f32)

    # Packed small biases: [b_ih (3H) | b_hh (3H) | b_concat (H)]  ->  (1, 7H) f32.
    b_small = jnp.concatenate([b_ih, b_hh, b_concat])[None, :]

    return {
        "embedding": (s * jax.random.normal(ks[0], (vocab_size, H), f32)).astype(jnp.bfloat16),
        "w_ih": w_ih.astype(jnp.bfloat16),          # (H, 3H) bf16
        "w_hh": w_hh.astype(jnp.bfloat16),          # (H, 3H) bf16
        "w_cat": w_concat.astype(jnp.bfloat16),     # (2H, H) bf16
        "b_small": b_small,                         # (1, 7H) f32
        "w_out": w_out.astype(jnp.bfloat16),        # (H, O)  bf16
        "b_out": b_out[None, :],                    # (1, O)  f32
    }


def reference_step(input_step, last_hidden, encoder_outputs, params):
    """Pure-JAX reference with the same bf16 casts as the kernel."""
    H = last_hidden.shape[2]
    emb = jnp.take(params["embedding"], input_step[0], axis=0)
    h = last_hidden[0].astype(jnp.float32)
    gi = jnp.dot(emb, params["w_ih"],
                 preferred_element_type=jnp.float32) + params["b_small"][:, :3 * H]
    gh = jnp.dot(h.astype(jnp.bfloat16), params["w_hh"],
                 preferred_element_type=jnp.float32) + params["b_small"][:, 3 * H:6 * H]
    r = jax.nn.sigmoid(gi[:, :H] + gh[:, :H])
    z = jax.nn.sigmoid(gi[:, H:2 * H] + gh[:, H:2 * H])
    n = jnp.tanh(gi[:, 2 * H:] + r * gh[:, 2 * H:])
    h_new = (1.0 - z) * n + z * h

    enc = jnp.transpose(encoder_outputs, (1, 0, 2)).astype(jnp.bfloat16)
    scores = jnp.einsum('bqh,bkh->bqk', h_new.astype(jnp.bfloat16)[:, None, :], enc,
                        preferred_element_type=jnp.float32)
    attn = jax.nn.softmax(scores, axis=-1)
    context = jnp.einsum('bqk,bkh->bqh', attn.astype(jnp.bfloat16), enc,
                         preferred_element_type=jnp.float32)[:, 0, :]
    hc = jnp.concatenate([h_new, context], axis=1).astype(jnp.bfloat16)
    cc = jnp.tanh(jnp.dot(hc, params["w_cat"], preferred_element_type=jnp.float32)
                  + params["b_small"][:, 6 * H:])
    logits = jnp.dot(cc.astype(jnp.bfloat16), params["w_out"],
                     preferred_element_type=jnp.float32) + params["b_out"]
    return jax.nn.softmax(logits, axis=1), h_new[None]


if __name__ == "__main__":
    # lane/sublane-aligned small shapes: B>=8, H and O multiples of 128.
    B, S, H, O, T = 8, 16, 128, 256, 4
    key = jax.random.PRNGKey(0)
    k_par, k_tok, k_hid, k_enc, k_seq = jax.random.split(key, 5)

    params = init_params(k_par, vocab_size=O, hidden_size=H, output_size=O)

    input_step = jax.random.randint(k_tok, (1, B), 0, O, dtype=jnp.int32)       # (1, B)
    last_hidden = 0.1 * jax.random.normal(k_hid, (1, B, H), jnp.float32)        # (1, B, H)
    encoder_outputs = 0.1 * jax.random.normal(k_enc, (S, B, H), jnp.float32)    # (S, B, H)

    # ---- single decode step (the module's forward) ----
    step = jax.jit(luong_attn_decoder_step)
    output, hidden = step(input_step, last_hidden, encoder_outputs, params)
    jax.block_until_ready((output, hidden))

    assert output.shape == (B, O) and hidden.shape == (1, B, H)
    assert bool(jnp.allclose(jnp.sum(output, axis=1), 1.0, atol=1e-3))

    ref_out, ref_hid = reference_step(input_step, last_hidden, encoder_outputs, params)
    assert bool(jnp.allclose(output, ref_out, atol=5e-3, rtol=5e-3))
    assert bool(jnp.allclose(hidden, ref_hid, atol=5e-3, rtol=5e-3))

    # ---- fused multi-step decode: T teacher-forced steps in one pallas_call ----
    tokens = jax.random.randint(k_seq, (T, B), 0, O, dtype=jnp.int32)           # (T, B)
    enc_bsh = prepare_encoder(encoder_outputs)
    fused = jax.jit(luong_attn_decoder_fused)
    probs_T, hidden_T = fused(tokens, last_hidden, enc_bsh, params)
    jax.block_until_ready((probs_T, hidden_T))

    assert probs_T.shape == (T, B, O) and hidden_T.shape == (1, B, H)
    assert bool(jnp.allclose(jnp.sum(probs_T, axis=-1), 1.0, atol=1e-3))

    ref_probs = []
    h_ref = last_hidden
    for t in range(T):
        p_t, h_ref = reference_step(tokens[t:t + 1], h_ref, encoder_outputs, params)
        ref_probs.append(p_t)
    ref_probs = jnp.stack(ref_probs)
    assert bool(jnp.allclose(probs_T, ref_probs, atol=5e-3, rtol=5e-3))
    assert bool(jnp.allclose(hidden_T, h_ref, atol=5e-3, rtol=5e-3))

    print("KERNEL_OK")
</pallas_src>

<mosaic_0001>
module attributes {stable_mosaic.version = 11 : i64} {
  func.func @luong_decoder_kernel(%arg0: i32, %arg1: i32, %arg2: memref<1x8x128xbf16, #tpu.memory_space<vmem>>, %arg3: memref<8x128xf32, #tpu.memory_space<vmem>>, %arg4: memref<8x16x128xbf16, #tpu.memory_space<vmem>>, %arg5: memref<128x384xbf16, #tpu.memory_space<vmem>>, %arg6: memref<128x384xbf16, #tpu.memory_space<vmem>>, %arg7: memref<256x128xbf16, #tpu.memory_space<vmem>>, %arg8: memref<1x896xf32, #tpu.memory_space<vmem>>, %arg9: memref<128x256xbf16, #tpu.memory_space<vmem>>, %arg10: memref<1x256xf32, #tpu.memory_space<vmem>>, %arg11: memref<1x8x256xf32, #tpu.memory_space<vmem>>, %arg12: memref<8x128xf32, #tpu.memory_space<vmem>>, %arg13: memref<8x128xf32, #tpu.memory_space<vmem>>, %arg14: memref<8x128xbf16, #tpu.memory_space<vmem>>) attributes {dimension_semantics = [#tpu.dimension_semantics<arbitrary>, #tpu.dimension_semantics<arbitrary>], iteration_bounds = array<i64: 1, 1>, scalar_prefetch = 0 : i64, scratch_operands = 2 : i64, tpu.core_type = #tpu.core_type<tc>, window_params = [{transform_indices = @transform_0, window_bounds = array<i64: 1, 8, 128>}, {pipeline_mode = #tpu.pipeline_mode<synchronous>, transform_indices = @transform_1, window_bounds = array<i64: 8, 128>}, {pipeline_mode = #tpu.pipeline_mode<synchronous>, transform_indices = @transform_2, window_bounds = array<i64: 8, 16, 128>}, {pipeline_mode = #tpu.pipeline_mode<synchronous>, transform_indices = @transform_3, window_bounds = array<i64: 128, 384>}, {pipeline_mode = #tpu.pipeline_mode<synchronous>, transform_indices = @transform_4, window_bounds = array<i64: 128, 384>}, {pipeline_mode = #tpu.pipeline_mode<synchronous>, transform_indices = @transform_5, window_bounds = array<i64: 256, 128>}, {pipeline_mode = #tpu.pipeline_mode<synchronous>, transform_indices = @transform_6, window_bounds = array<i64: 1, 896>}, {transform_indices = @transform_7, window_bounds = array<i64: 128, 256>}, {transform_indices = @transform_8, window_bounds = array<i64: 1, 256>}, {transform_indices = @transform_9, window_bounds = array<i64: 1, 8, 256>}, {pipeline_mode = #tpu.pipeline_mode<synchronous>, transform_indices = @transform_10, window_bounds = array<i64: 8, 128>}]} {
    %c0_i32 = arith.constant 0 : i32
    %0 = arith.cmpi eq, %arg0, %c0_i32 : i32
    %c0_i32_0 = arith.constant 0 : i32
    %1 = arith.cmpi eq, %arg1, %c0_i32_0 : i32
    %2 = arith.andi %0, %1 : i1
    %3 = arith.extui %2 : i1 to i32
    %c0_i32_1 = arith.constant 0 : i32
    %4 = arith.cmpi ne, %3, %c0_i32_1 : i32
    scf.if %4 {
      %c0_16 = arith.constant 0 : index
      %c0_17 = arith.constant 0 : index
      %28 = vector.load %arg3[%c0_16, %c0_17] : memref<8x128xf32, #tpu.memory_space<vmem>>, vector<8x128xf32>
      %c0_18 = arith.constant 0 : index
      %c0_19 = arith.constant 0 : index
      %29 = vector.load %arg13[%c0_18, %c0_19] : memref<8x128xf32, #tpu.memory_space<vmem>>, vector<8x128xf32>
      tpu.vector_store %arg13[%c0_18, %c0_19], %28 {strides = array<i32>} : memref<8x128xf32, #tpu.memory_space<vmem>>, vector<8x128xf32>,
    } else {
    }
    %c0_i32_2 = arith.constant 0 : i32
    %5 = arith.cmpi eq, %arg1, %c0_i32_2 : i32
    %6 = arith.extui %5 : i1 to i32
    %c0_i32_3 = arith.constant 0 : i32
    %7 = arith.cmpi ne, %6, %c0_i32_3 : i32
    scf.if %7 {
      %c0_16 = arith.constant 0 : index
      %c0_17 = arith.constant 0 : index
      %c0_18 = arith.constant 0 : index
      %28 = vector.load %arg2[%c0_16, %c0_17, %c0_18] : memref<1x8x128xbf16, #tpu.memory_space<vmem>>, vector<1x8x128xbf16>
      %29 = vector.shape_cast %28 : vector<1x8x128xbf16> to vector<8x128xbf16>
      %c0_19 = arith.constant 0 : index
      %c0_20 = arith.constant 0 : index
      %30 = vector.load %arg13[%c0_19, %c0_20] : memref<8x128xf32, #tpu.memory_space<vmem>>, vector<8x128xf32>
      %c0_21 = arith.constant 0 : index
      %c0_22 = arith.constant 0 : index
      %31 = vector.load %arg5[%c0_21, %c0_22] : memref<128x384xbf16, #tpu.memory_space<vmem>>, vector<128x384xbf16>
      %cst_23 = arith.constant dense<0.000000e+00> : vector<8x384xf32>
      %32 = tpu.matmul %29, %31, %cst_23 {dimension_numbers = #tpu.dot_dimension_numbers<[1], [0], [0], [1], [0, 0, 1, 1], [], []>} : vector<8x128xbf16>, vector<128x384xbf16>, vector<8x384xf32> -> vector<8x384xf32>
      %c0_24 = arith.constant 0 : index
      %c0_25 = arith.constant 0 : index
      %33 = vector.load %arg8[%c0_24, %c0_25] : memref<1x896xf32, #tpu.memory_space<vmem>>, vector<1x384xf32>
      %34 = vector.broadcast %33 : vector<1x384xf32> to vector<8x384xf32>
      %35 = arith.addf %32, %34 : vector<8x384xf32>
      %36 = arith.truncf %30 : vector<8x128xf32> to vector<8x128xbf16>
      %c0_26 = arith.constant 0 : index
      %c0_27 = arith.constant 0 : index
      %37 = vector.load %arg6[%c0_26, %c0_27] : memref<128x384xbf16, #tpu.memory_space<vmem>>, vector<128x384xbf16>
      %cst_28 = arith.constant dense<0.000000e+00> : vector<8x384xf32>
      %38 = tpu.matmul %36, %37, %cst_28 {dimension_numbers = #tpu.dot_dimension_numbers<[1], [0], [0], [1], [0, 0, 1, 1], [], []>} : vector<8x128xbf16>, vector<128x384xbf16>, vector<8x384xf32> -> vector<8x384xf32>
      %c0_29 = arith.constant 0 : index
      %c384 = arith.constant 384 : index
      %39 = vector.load %arg8[%c0_29, %c384] : memref<1x896xf32, #tpu.memory_space<vmem>>, vector<1x384xf32>
      %40 = vector.broadcast %39 : vector<1x384xf32> to vector<8x384xf32>
      %41 = arith.addf %38, %40 : vector<8x384xf32>
      %42 = vector.extract_strided_slice %35 {offsets = [0, 0], sizes = [8, 128], strides = [1, 1]} : vector<8x384xf32> to vector<8x128xf32>
      %43 = vector.extract_strided_slice %41 {offsets = [0, 0], sizes = [8, 128], strides = [1, 1]} : vector<8x384xf32> to vector<8x128xf32>
      %44 = arith.addf %42, %43 : vector<8x128xf32>
      %45 = arith.negf %44 : vector<8x128xf32>
      %46 = math.exp %45 : vector<8x128xf32>
      %cst_30 = arith.constant 1.000000e+00 : f32
      %47 = vector.broadcast %cst_30 : f32 to vector<8x128xf32>
      %48 = arith.addf %47, %46 : vector<8x128xf32>
      %49 = arith.divf %47, %48 : vector<8x128xf32>
      %50 = vector.extract_strided_slice %35 {offsets = [0, 128], sizes = [8, 128], strides = [1, 1]} : vector<8x384xf32> to vector<8x128xf32>
      %51 = vector.extract_strided_slice %41 {offsets = [0, 128], sizes = [8, 128], strides = [1, 1]} : vector<8x384xf32> to vector<8x128xf32>
      %52 = arith.addf %50, %51 : vector<8x128xf32>
      %53 = arith.negf %52 : vector<8x128xf32>
      %54 = math.exp %53 : vector<8x128xf32>
      %cst_31 = arith.constant 1.000000e+00 : f32
      %55 = vector.broadcast %cst_31 : f32 to vector<8x128xf32>
      %56 = arith.addf %55, %54 : vector<8x128xf32>
      %57 = arith.divf %55, %56 : vector<8x128xf32>
      %58 = vector.extract_strided_slice %35 {offsets = [0, 256], sizes = [8, 128], strides = [1, 1]} : vector<8x384xf32> to vector<8x128xf32>
      %59 = vector.extract_strided_slice %41 {offsets = [0, 256], sizes = [8, 128], strides = [1, 1]} : vector<8x384xf32> to vector<8x128xf32>
      %60 = arith.mulf %49, %59 : vector<8x128xf32>
      %61 = arith.addf %58, %60 : vector<8x128xf32>
      %62 = math.tanh %61 : vector<8x128xf32>
      %cst_32 = arith.constant 1.000000e+00 : f32
      %63 = vector.broadcast %cst_32 : f32 to vector<8x128xf32>
      %64 = arith.subf %63, %57 : vector<8x128xf32>
      %65 = arith.mulf %64, %62 : vector<8x128xf32>
      %66 = arith.mulf %57, %30 : vector<8x128xf32>
      %67 = arith.addf %65, %66 : vector<8x128xf32>
      %c0_33 = arith.constant 0 : index
      %c0_34 = arith.constant 0 : index
      %c0_35 = arith.constant 0 : index
      %68 = vector.load %arg4[%c0_33, %c0_34, %c0_35] : memref<8x16x128xbf16, #tpu.memory_space<vmem>>, vector<8x16x128xbf16>
      %69 = arith.truncf %67 : vector<8x128xf32> to vector<8x128xbf16>
      %70 = vector.shape_cast %69 : vector<8x128xbf16> to vector<8x1x128xbf16>
      "tpu.trace_start"() <{level = 10 : i32, message = "bqh,bkh->bqk"}> : () -> ()
      %cst_36 = arith.constant dense<0.000000e+00> : vector<8x1x16xf32>
      %71 = tpu.matmul %70, %68, %cst_36 {dimension_numbers = #tpu.dot_dimension_numbers<[2], [2], [1], [1], [0, 0, 0, 1, 1, 1], [0], [0]>} : vector<8x1x128xbf16>, vector<8x16x128xbf16>, vector<8x1x16xf32> -> vector<8x1x16xf32>
      "tpu.trace_stop"() : () -> ()
      %cst_37 = arith.constant dense<0xFF800000> : vector<8x1xf32>
      %72 = vector.multi_reduction <maximumf>, %71, %cst_37 [2] : vector<8x1x16xf32> to vector<8x1xf32>
      %73 = vector.shape_cast %72 : vector<8x1xf32> to vector<8x1x1xf32>
      %74 = vector.broadcast %73 : vector<8x1x1xf32> to vector<8x1x16xf32>
      %75 = arith.subf %71, %74 : vector<8x1x16xf32>
      %76 = math.exp %75 : vector<8x1x16xf32>
      %cst_38 = arith.constant dense<0.000000e+00> : vector<8x1xf32>
      %77 = vector.multi_reduction <add>, %76, %cst_38 [2] : vector<8x1x16xf32> to vector<8x1xf32>
      %78 = vector.shape_cast %77 : vector<8x1xf32> to vector<8x1x1xf32>
      %79 = tpu.reciprocal %78 {approx = true} : vector<8x1x1xf32> -> vector<8x1x1xf32>
      %80 = vector.broadcast %79 : vector<8x1x1xf32> to vector<8x1x16xf32>
      %81 = arith.mulf %76, %80 : vector<8x1x16xf32>
      %82 = arith.truncf %81 : vector<8x1x16xf32> to vector<8x1x16xbf16>
      "tpu.trace_start"() <{level = 10 : i32, message = "bqk,bkh->bqh"}> : () -> ()
      %cst_39 = arith.constant dense<0.000000e+00> : vector<8x1x128xf32>
      %83 = tpu.matmul %82, %68, %cst_39 {dimension_numbers = #tpu.dot_dimension_numbers<[2], [1], [1], [2], [0, 0, 0, 1, 1, 2], [0], [0]>} : vector<8x1x16xbf16>, vector<8x16x128xbf16>, vector<8x1x128xf32> -> vector<8x1x128xf32>
      "tpu.trace_stop"() : () -> ()
      %84 = vector.shape_cast %83 : vector<8x1x128xf32> to vector<8x128xf32>
      %85 = tpu.concatenate %67, %84 in 1 : vector<8x128xf32>, vector<8x128xf32> -> vector<8x256xf32>
      %86 = arith.truncf %85 : vector<8x256xf32> to vector<8x256xbf16>
      %c0_40 = arith.constant 0 : index
      %c0_41 = arith.constant 0 : index
      %87 = vector.load %arg7[%c0_40, %c0_41] : memref<256x128xbf16, #tpu.memory_space<vmem>>, vector<256x128xbf16>
      %cst_42 = arith.constant dense<0.000000e+00> : vector<8x128xf32>
      %88 = tpu.matmul %86, %87, %cst_42 {dimension_numbers = #tpu.dot_dimension_numbers<[1], [0], [0], [1], [0, 0, 1, 1], [], []>} : vector<8x256xbf16>, vector<256x128xbf16>, vector<8x128xf32> -> vector<8x128xf32>
      %c0_43 = arith.constant 0 : index
      %c768 = arith.constant 768 : index
      %89 = vector.load %arg8[%c0_43, %c768] : memref<1x896xf32, #tpu.memory_space<vmem>>, vector<1x128xf32>
      %90 = vector.broadcast %89 : vector<1x128xf32> to vector<8x128xf32>
      %91 = arith.addf %88, %90 : vector<8x128xf32>
      %92 = math.tanh %91 : vector<8x128xf32>
      %93 = arith.truncf %92 : vector<8x128xf32> to vector<8x128xbf16>
      %c0_44 = arith.constant 0 : index
      %c0_45 = arith.constant 0 : index
      %94 = vector.load %arg14[%c0_44, %c0_45] : memref<8x128xbf16, #tpu.memory_space<vmem>>, vector<8x128xbf16>
      tpu.vector_store %arg14[%c0_44, %c0_45], %93 {strides = array<i32>} : memref<8x128xbf16, #tpu.memory_space<vmem>>, vector<8x128xbf16>,
      %c0_46 = arith.constant 0 : index
      %c0_47 = arith.constant 0 : index
      %95 = vector.load %arg13[%c0_46, %c0_47] : memref<8x128xf32, #tpu.memory_space<vmem>>, vector<8x128xf32>
      tpu.vector_store %arg13[%c0_46, %c0_47], %67 {strides = array<i32>} : memref<8x128xf32, #tpu.memory_space<vmem>>, vector<8x128xf32>,
    } else {
    }
    %c0 = arith.constant 0 : index
    %c0_4 = arith.constant 0 : index
    %8 = vector.load %arg14[%c0, %c0_4] : memref<8x128xbf16, #tpu.memory_space<vmem>>, vector<8x128xbf16>
    %c0_5 = arith.constant 0 : index
    %c0_6 = arith.constant 0 : index
    %9 = vector.load %arg9[%c0_5, %c0_6] : memref<128x256xbf16, #tpu.memory_space<vmem>>, vector<128x256xbf16>
    %cst = arith.constant dense<0.000000e+00> : vector<8x256xf32>
    %10 = tpu.matmul %8, %9, %cst {dimension_numbers = #tpu.dot_dimension_numbers<[1], [0], [0], [1], [0, 0, 1, 1], [], []>} : vector<8x128xbf16>, vector<128x256xbf16>, vector<8x256xf32> -> vector<8x256xf32>
    %c0_7 = arith.constant 0 : index
    %c0_8 = arith.constant 0 : index
    %11 = vector.load %arg10[%c0_7, %c0_8] : memref<1x256xf32, #tpu.memory_space<vmem>>, vector<1x256xf32>
    %12 = vector.broadcast %11 : vector<1x256xf32> to vector<8x256xf32>
    %13 = arith.addf %10, %12 : vector<8x256xf32>
    %c256_i32 = arith.constant 256 : i32
    %14 = arith.muli %arg1, %c256_i32 : i32
    %15 = tpu.assume_multiple %14, 256 : i32
    %c0_9 = arith.constant 0 : index
    %c0_10 = arith.constant 0 : index
    %16 = arith.index_cast %15 : i32 to index
    %17 = vector.load %arg11[%c0_9, %c0_10, %16] : memref<1x8x256xf32, #tpu.memory_space<vmem>>, vector<1x8x256xf32>
    %18 = vector.shape_cast %17 : vector<1x8x256xf32> to vector<8x256xf32>
    %19 = vector.shape_cast %13 : vector<8x256xf32> to vector<1x8x256xf32>
    tpu.vector_store %arg11[%c0_9, %c0_10, %16], %19 {strides = array<i32>} : memref<1x8x256xf32, #tpu.memory_space<vmem>>, vector<1x8x256xf32>,
    %c0_i32_11 = arith.constant 0 : i32
    %20 = arith.cmpi eq, %arg1, %c0_i32_11 : i32
    %21 = arith.extui %20 : i1 to i32
    %c0_i32_12 = arith.constant 0 : i32
    %22 = arith.cmpi ne, %21, %c0_i32_12 : i32
    scf.if %22 {
      %c0_16 = arith.constant 0 : index
      %c0_17 = arith.constant 0 : index
      %c0_18 = arith.constant 0 : index
      %28 = vector.load %arg11[%c0_16, %c0_17, %c0_18] : memref<1x8x256xf32, #tpu.memory_space<vmem>>, vector<1x8x256xf32>
      %29 = vector.shape_cast %28 : vector<1x8x256xf32> to vector<8x256xf32>
      %cst_19 = arith.constant dense<0xFF800000> : vector<8xf32>
      %30 = vector.multi_reduction <maximumf>, %29, %cst_19 [1] : vector<8x256xf32> to vector<8xf32>
      %31 = vector.shape_cast %30 : vector<8xf32> to vector<8x1xf32>
      %32 = vector.broadcast %31 : vector<8x1xf32> to vector<8x256xf32>
      %33 = arith.subf %29, %32 : vector<8x256xf32>
      %34 = math.exp %33 : vector<8x256xf32>
      %cst_20 = arith.constant dense<0.000000e+00> : vector<8xf32>
      %35 = vector.multi_reduction <add>, %34, %cst_20 [1] : vector<8x256xf32> to vector<8xf32>
      %36 = vector.shape_cast %35 : vector<8xf32> to vector<8x1xf32>
      %37 = tpu.reciprocal %36 : vector<8x1xf32> -> vector<8x1xf32>
      %38 = vector.broadcast %37 : vector<8x1xf32> to vector<8x256xf32>
      %39 = arith.mulf %34, %38 : vector<8x256xf32>
      %c0_21 = arith.constant 0 : index
      %c0_22 = arith.constant 0 : index
      %c0_23 = arith.constant 0 : index
      %40 = vector.load %arg11[%c0_21, %c0_22, %c0_23] : memref<1x8x256xf32, #tpu.memory_space<vmem>>, vector<1x8x256xf32>
      %41 = vector.shape_cast %40 : vector<1x8x256xf32> to vector<8x256xf32>
      %42 = vector.shape_cast %39 : vector<8x256xf32> to vector<1x8x256xf32>
      tpu.vector_store %arg11[%c0_21, %c0_22, %c0_23], %42 {strides = array<i32>} : memref<1x8x256xf32, #tpu.memory_space<vmem>>, vector<1x8x256xf32>,
    } else {
    }
    %c0_i32_13 = arith.constant 0 : i32
    %23 = arith.cmpi eq, %arg0, %c0_i32_13 : i32
    %c0_i32_14 = arith.constant 0 : i32
    %24 = arith.cmpi eq, %arg1, %c0_i32_14 : i32
    %25 = arith.andi %23, %24 : i1
    %26 = arith.extui %25 : i1 to i32
    %c0_i32_15 = arith.constant 0 : i32
    %27 = arith.cmpi ne, %26, %c0_i32_15 : i32
    scf.if %27 {
      %c0_16 = arith.constant 0 : index
      %c0_17 = arith.constant 0 : index
      %28 = vector.load %arg13[%c0_16, %c0_17] : memref<8x128xf32, #tpu.memory_space<vmem>>, vector<8x128xf32>
      %c0_18 = arith.constant 0 : index
      %c0_19 = arith.constant 0 : index
      %29 = vector.load %arg12[%c0_18, %c0_19] : memref<8x128xf32, #tpu.memory_space<vmem>>, vector<8x128xf32>
      tpu.vector_store %arg12[%c0_18, %c0_19], %28 {strides = array<i32>} : memref<8x128xf32, #tpu.memory_space<vmem>>, vector<8x128xf32>,
    } else {
    }
    return
  }
  func.func @transform_0(%arg0: i32, %arg1: i32) -> (i32, i32, i32) {
    %c0_i32 = arith.constant 0 : i32
    %c0_i32_0 = arith.constant 0 : i32
    %c0_i32_1 = arith.constant 0 : i32
    return %arg0, %c0_i32, %c0_i32_0 : i32, i32, i32
  }
  func.func @transform_1(%arg0: i32, %arg1: i32) -> (i32, i32) {
    %c0_i32 = arith.constant 0 : i32
    %c0_i32_0 = arith.constant 0 : i32
    %c0_i32_1 = arith.constant 0 : i32
    return %c0_i32, %c0_i32_0 : i32, i32
  }
  func.func @transform_2(%arg0: i32, %arg1: i32) -> (i32, i32, i32) {
    %c0_i32 = arith.constant 0 : i32
    %c0_i32_0 = arith.constant 0 : i32
    %c0_i32_1 = arith.constant 0 : i32
    %c0_i32_2 = arith.constant 0 : i32
    return %c0_i32, %c0_i32_0, %c0_i32_1 : i32, i32, i32
  }
  func.func @transform_3(%arg0: i32, %arg1: i32) -> (i32, i32) {
    %c0_i32 = arith.constant 0 : i32
    %c0_i32_0 = arith.constant 0 : i32
    %c0_i32_1 = arith.constant 0 : i32
    return %c0_i32, %c0_i32_0 : i32, i32
  }
  func.func @transform_4(%arg0: i32, %arg1: i32) -> (i32, i32) {
    %c0_i32 = arith.constant 0 : i32
    %c0_i32_0 = arith.constant 0 : i32
    %c0_i32_1 = arith.constant 0 : i32
    return %c0_i32, %c0_i32_0 : i32, i32
  }
  func.func @transform_5(%arg0: i32, %arg1: i32) -> (i32, i32) {
    %c0_i32 = arith.constant 0 : i32
    %c0_i32_0 = arith.constant 0 : i32
    %c0_i32_1 = arith.constant 0 : i32
    return %c0_i32, %c0_i32_0 : i32, i32
  }
  func.func @transform_6(%arg0: i32, %arg1: i32) -> (i32, i32) {
    %c0_i32 = arith.constant 0 : i32
    %c0_i32_0 = arith.constant 0 : i32
    %c0_i32_1 = arith.constant 0 : i32
    return %c0_i32, %c0_i32_0 : i32, i32
  }
  func.func @transform_7(%arg0: i32, %arg1: i32) -> (i32, i32) {
    %c0_i32 = arith.constant 0 : i32
    %c0_i32_0 = arith.constant 0 : i32
    return %c0_i32, %arg1 : i32, i32
  }
  func.func @transform_8(%arg0: i32, %arg1: i32) -> (i32, i32) {
    %c0_i32 = arith.constant 0 : i32
    %c0_i32_0 = arith.constant 0 : i32
    return %c0_i32, %arg1 : i32, i32
  }
  func.func @transform_9(%arg0: i32, %arg1: i32) -> (i32, i32, i32) {
    %c0_i32 = arith.constant 0 : i32
    %c0_i32_0 = arith.constant 0 : i32
    %c0_i32_1 = arith.constant 0 : i32
    return %arg0, %c0_i32, %c0_i32_0 : i32, i32, i32
  }
  func.func @transform_10(%arg0: i32, %arg1: i32) -> (i32, i32) {
    %c0_i32 = arith.constant 0 : i32
    %c0_i32_0 = arith.constant 0 : i32
    %c0_i32_1 = arith.constant 0 : i32
    return %c0_i32, %c0_i32_0 : i32, i32
  }
}

</mosaic_0001>

<bundles_post_ra>
// kernel: luong_attn_decoder_step.1
= control target key start
LH: loop header
LB: loop body
LE: loop exit
PB: predicated region body
PF: predicated region fallthrough
CT: control target
= control target key end

     0   :  { %16 = vsyncpa [#allocation5], 0  ;;  %s2932_s0 = inlined_call_operand.vmem [shape: bf16[1,8,128], index: 0, kind: input, shape index: {}]   ;;  %s2933_s1 = inlined_call_operand.vmem [shape: f32[8,128], index: 1, kind: input, shape index: {}, may-alias: {1,10}]   ;;  %s2934_s2 = inlined_call_operand.vmem [shape: bf16[8,16,128], index: 2, kind: input, shape index: {}]   ;;  %s2935_s3 = inlined_call_operand.vmem [shape: bf16[128,384], index: 3, kind: input, shape index: {}]   ;;  %s2936_s4 = inlined_call_operand.hbm [shape: bf16[128,384], index: 4, kind: input, shape index: {}]   ;;  %s2937_s5 = inlined_call_operand.hbm [shape: bf16[256,128], index: 5, kind: input, shape index: {}]   ;;  %s2938_s6 = inlined_call_operand.vmem [shape: f32[1,896], index: 6, kind: input, shape index: {}]   ;;  %s2939_s7 = inlined_call_operand.hbm [shape: bf16[128,256], index: 7, kind: input, shape index: {}]   ;;  %s2940_s8 = inlined_call_operand.vmem [shape: f32[1,256], index: 8, kind: input, shape index: {}]   ;;  %s2941_s9 = inlined_call_operand.hbm [shape: f32[1,8,256], index: 9, kind: output, shape index: {0}]   ;;  %s2942_s10 = inlined_call_operand.vmem [shape: f32[8,128], index: 10, kind: output, shape index: {1}, may-alias: {1,10}]  }
   0x1   :  { %17 = vsyncpa [#allocation8], 0 }
   0x2   :  { %18 = vsyncpa [#allocation6], 0  ;;  %s2540_s13 = smov [#allocation7]   ;;  %s2446_s17 = scalar_lea.hbm %s2937_s5, 2048 }
   0x3   :  { %s44_s14 = sshll.u32 %s2540_s13, 4  ;;  %p2447_p0 = scmp.ne.s32.totalorder %s2937_s5, %s2446_s17  ;;  %s45_s14 = int_to_ptr.vmem [resolvable:$true] %s44_s14 }
   0x4   :  { %p2450_p1 = scmp.lt.u32.totalorder %s2446_s17, %s2937_s5 }
   0x6   :  { %p2452_p2 = pnand %p2450_p1, %p2447_p0 }
   0x8   :  { %2455 = shalt.err (!%p2452_p2)
}
   0x9   :  { %s2456_s22 = scalar_lea.vmem %s45_s14, 2048  ;;  %p2461_p4 = scmp.lt.s32.totalorder %s45_s14, %s45_s14 }
   0xa   :  { %p2457_p3 = scmp.ne.s32.totalorder %s45_s14, %s2456_s22  ;;  %p2462_p5 = scmp.lt.s32.totalorder %s2456_s22, %s2456_s22 }
   0xc   :  { %p2463_p6 = por %p2462_p5, %p2461_p4 }
   0xe   :  { %p2464_p7 = pnand %p2463_p6, %p2457_p3 }
  0x10   :  { %2467 = shalt.err (!%p2464_p7)
}
  0x11   :  { %s2541_s23 = smov 64   ;;  %s2542_s24 = smov 4  }
  0x12   :  { %50 = dma.hbm_to_vmem [thread:$0]  %s2937_s5, 2048, %s45_s14, [#allocation8], %s2541_s23, %s2541_s23, %s2542_s24  }
  0x13   :  { %s2543_s27 = smov [#allocation4]   ;;  %s2468_s11 = scalar_lea.hbm %s2936_s4, 3072 }
  0x14   :  { %s32_s28 = sshll.u32 %s2543_s27, 4  ;;  %p2469_p8 = scmp.ne.s32.totalorder %s2936_s4, %s2468_s11  ;;  %s33_s28 = int_to_ptr.vmem [resolvable:$true] %s32_s28 }
  0x15   :  { %p2472_p9 = scmp.lt.u32.totalorder %s2468_s11, %s2936_s4 }
  0x17   :  { %p2474_p10 = pnand %p2472_p9, %p2469_p8 }
  0x19   :  { %2477 = shalt.err (!%p2474_p10)
}
  0x1a   :  { %s2478_s17 = scalar_lea.vmem %s33_s28, 3072  ;;  %p2483_p12 = scmp.lt.s32.totalorder %s33_s28, %s33_s28 }
  0x1b   :  { %p2479_p11 = scmp.ne.s32.totalorder %s33_s28, %s2478_s17  ;;  %p2484_p13 = scmp.lt.s32.totalorder %s2478_s17, %s2478_s17 }
  0x1d   :  { %p2485_p0 = por %p2484_p13, %p2483_p12 }
  0x1f   :  { %p2486_p1 = pnand %p2485_p0, %p2479_p11 }
  0x21   :  { %2489 = shalt.err (!%p2486_p1)
}
  0x22   :  { %s2544_s5 = smov 192   ;;  %s2545_s14 = smov 12  }
  0x23   :  { %38 = dma.hbm_to_vmem [thread:$0]  %s2936_s4, 3072, %s33_s28, [#allocation5], %s2544_s5, %s2544_s5, %s2545_s14  }
  0x24   :  { %s2546_s20 = smov [#allocation9]   ;;  %s2490_s24 = scalar_lea.hbm %s2939_s7, 2048 }
  0x25   :  { %s58_s21 = sshll.u32 %s2546_s20, 4  ;;  %p2491_p2 = scmp.ne.s32.totalorder %s2939_s7, %s2490_s24  ;;  %s59_s21 = int_to_ptr.vmem [resolvable:$true] %s58_s21 }
  0x26   :  { %p2494_p3 = scmp.lt.u32.totalorder %s2490_s24, %s2939_s7 }
  0x28   :  { %p2496_p4 = pnand %p2494_p3, %p2491_p2 }
  0x2a   :  { %2499 = shalt.err (!%p2496_p4)
}
  0x2b   :  { %s2500_s30 = scalar_lea.vmem %s59_s21, 2048  ;;  %p2505_p6 = scmp.lt.s32.totalorder %s59_s21, %s59_s21 }
  0x2c   :  { %p2501_p5 = scmp.ne.s32.totalorder %s59_s21, %s2500_s30  ;;  %p2506_p7 = scmp.lt.s32.totalorder %s2500_s30, %s2500_s30 }
  0x2e   :  { %p2507_p8 = por %p2506_p7, %p2505_p6 }
  0x30   :  { %p2508_p9 = pnand %p2507_p8, %p2501_p5 }
  0x32   :  { %2511 = shalt.err (!%p2508_p9)
}
  0x33   :  { %s2547_s4 = smov 128   ;;  %s2548_s28 = smov 8  }
  0x34   :  { %64 = dma.hbm_to_vmem [thread:$0]  %s2939_s7, 2048, %s59_s21, [#allocation8], %s2547_s4, %s2547_s4, %s2548_s28  }
  0x35   :  { %2534 = dma.done.wait [#allocation5], 3072  }
  0x36   :  { %2535 = vsyncadd [#allocation5], 4294964224 }
  0x37   :  { %2536 = dma.done.wait [#allocation8], 4096  }
  0x38   :  { %2537 = vsyncadd [#allocation8], 4294963200  ;;  %v2549_v0 = vmov 0.0   ;;  %v2550_v1 = vmov 0   ;;  %vm2551_vm0 = vmmov 0   ;;  %v2742_v48 = vld [vmem:[%s2933_s1] sm:$0xff]  ;;  %v124_v59 = vlaneseq }
  0x39   :  { %2126 = vmatprep.subr.bf16.mxu1 %v2549_v0  ;;  %299 = vmatprep.mubr.bf16.mxu0 %v2550_v1  ;;  %v2284_v2 = vld [vmem:[%s2935_s3 + $0x4] ss:$12 sps:$4 sm:$0xff]   ;;  %v2286_v3 = vld [vmem:[%s2935_s3] ss:$12 sps:$4 sm:$0xff]   ;;  %v2287_v4 = vld [vmem:[%s2935_s3 + $0x1c] ss:$12 sps:$4 sm:$0xff]   ;;  %v348_v50 = vpack.c.bf16 %v2742_v48, %v2742_v48 }
  0x3a   :  { %2142 = vmatprep.mubr.msk.bf16.mxu1 %vm2551_vm0, %v2549_v0  ;;  %267 = vmatprep.subr.bf16.mxu0 %v2284_v2  ;;  %v2289_v5 = vld [vmem:[%s2935_s3 + $0x18] ss:$12 sps:$4 sm:$0xff]   ;;  %v2290_v6 = vld [vmem:[%s2935_s3 + $0x34] ss:$12 sps:$4 sm:$0xff]   ;;  %v2292_v7 = vld [vmem:[%s2935_s3 + $0x30] ss:$12 sps:$4 sm:$0xff]  }
  0x3b   :  { %268 = vmatpush1.bf16.msra.mxu0 %v2286_v3  ;;  %v2293_v8 = vld [vmem:[%s2935_s3 + $0x4c] ss:$12 sps:$4 sm:$0xff]   ;;  %v2304_v9 = vld [vmem:[%s2935_s3 + $0x8] ss:$12 sps:$4 sm:$0xff]   ;;  %v2296_v11 = vld [vmem:[%s2935_s3 + $0x64] ss:$12 sps:$4 sm:$0xff]  }
  0x3c   :  { %269 = vmatprep.subr.bf16.mxu0 %v2287_v4  ;;  %v2295_v10 = vld [vmem:[%s2935_s3 + $0x48] ss:$12 sps:$4 sm:$0xff]   ;;  %2127 = vmatpush3.bf16.msra.mxu1 %v2304_v9  ;;  %v2308_v12 = vld [vmem:[%s2935_s3 + $0x20] ss:$12 sps:$4 sm:$0xff]   ;;  %v2310_v14 = vld [vmem:[%s2935_s3 + $0x38] ss:$12 sps:$4 sm:$0xff]  }
  0x3d   :  { %2128 = vmatprep.subr.bf16.mxu1 %v2549_v0  ;;  %v2298_v13 = vld [vmem:[%s2935_s3 + $0x60] ss:$12 sps:$4 sm:$0xff]   ;;  %v2299_v15 = vld [vmem:[%s2935_s3 + $0x7c] ss:$12 sps:$4 sm:$0xff]   ;;  %v2301_v16 = vld [vmem:[%s2935_s3 + $0x78] ss:$12 sps:$4 sm:$0xff]  }
  0x3e   :  { %v2314_v17 = vld [vmem:[%s2935_s3 + $0x50] ss:$12 sps:$4 sm:$0xff]   ;;  %v2302_v18 = vld [vmem:[%s2935_s3 + $0x94] ss:$12 sps:$4 sm:$0xff]   ;;  %v2306_v21 = vld [vmem:[%s2935_s3 + $0xac] ss:$12 sps:$4 sm:$0xff]  }
  0x3f   :  { %270 = vmatpush1.bf16.msra.mxu0 %v2289_v5  ;;  %v2305_v19 = vld [vmem:[%s2935_s3 + $0x90] ss:$12 sps:$4 sm:$0xff]   ;;  %v2318_v20 = vld [vmem:[%s2935_s3 + $0x68] ss:$12 sps:$4 sm:$0xff]   ;;  %v2322_v23 = vld [vmem:[%s2935_s3 + $0x80] ss:$12 sps:$4 sm:$0xff]  }
  0x40   :  { %271 = vmatprep.subr.bf16.mxu0 %v2290_v6  ;;  %2129 = vmatpush3.bf16.msra.mxu1 %v2308_v12  ;;  %v2309_v22 = vld [vmem:[%s2935_s3 + $0xa8] ss:$12 sps:$4 sm:$0xff]   ;;  %v2311_v25 = vld [vmem:[#allocation4] ss:$12 sps:$4 sm:$0xff]   ;;  %v88_v26 = vld [vmem:[%s2932_s0] sm:$0xf] }
  0x41   :  { %2130 = vmatprep.subr.bf16.mxu1 %v2549_v0  ;;  %v2313_v24 = vld [vmem:[#allocation4 + $0x4] ss:$12 sps:$4 sm:$0xff]   ;;  %v2326_v27 = vld [vmem:[%s2935_s3 + $0x98] ss:$12 sps:$4 sm:$0xff]   ;;  %v2317_v28 = vld [vmem:[#allocation4 + $0x1c] ss:$12 sps:$4 sm:$0xff]  }
  0x42   :  { %v2315_v29 = vld [vmem:[#allocation4 + $0x18] ss:$12 sps:$4 sm:$0xff]   ;;  %v2321_v31 = vld [vmem:[#allocation4 + $0x34] ss:$12 sps:$4 sm:$0xff]   ;;  %v2319_v32 = vld [vmem:[#allocation4 + $0x30] ss:$12 sps:$4 sm:$0xff]  }
  0x43   :  { %272 = vmatpush1.bf16.msra.mxu0 %v2292_v7  ;;  %v2330_v30 = vld [vmem:[%s2935_s3 + $0xb0] ss:$12 sps:$4 sm:$0xff]   ;;  %v2337_v34 = vld [vmem:[#allocation4 + $0x8] ss:$12 sps:$4 sm:$0xff]   ;;  %v2329_v37 = vld [vmem:[#allocation4 + $0x64] ss:$12 sps:$4 sm:$0xff]  }
  0x44   :  { %273 = vmatprep.subr.bf16.mxu0 %v2293_v8  ;;  %2131 = vmatpush3.bf16.msra.mxu1 %v2310_v14  ;;  %v2325_v33 = vld [vmem:[#allocation4 + $0x4c] ss:$12 sps:$4 sm:$0xff]   ;;  %v2323_v35 = vld [vmem:[#allocation4 + $0x48] ss:$12 sps:$4 sm:$0xff]   ;;  %v2343_v42 = vld [vmem:[#allocation4 + $0x50] ss:$12 sps:$4 sm:$0xff]  }
  0x45   :  { %2132 = vmatprep.subr.bf16.mxu1 %v2549_v0  ;;  %v2341_v36 = vld [vmem:[#allocation4 + $0x20] ss:$12 sps:$4 sm:$0xff]   ;;  %v2342_v39 = vld [vmem:[#allocation4 + $0x38] ss:$12 sps:$4 sm:$0xff]   ;;  %v2333_v40 = vld [vmem:[#allocation4 + $0x7c] ss:$12 sps:$4 sm:$0xff]  }
  0x46   :  { %v2327_v38 = vld [vmem:[#allocation4 + $0x60] ss:$12 sps:$4 sm:$0xff]   ;;  %v2331_v41 = vld [vmem:[#allocation4 + $0x78] ss:$12 sps:$4 sm:$0xff]   ;;  %v2334_v44 = vld [vmem:[#allocation4 + $0x90] ss:$12 sps:$4 sm:$0xff]  }
  0x47   :  { %274 = vmatpush1.bf16.msra.mxu0 %v2295_v10  ;;  %v2336_v43 = vld [vmem:[#allocation4 + $0x94] ss:$12 sps:$4 sm:$0xff]   ;;  %v2340_v46 = vld [vmem:[#allocation4 + $0xac] ss:$12 sps:$4 sm:$0xff]   ;;  %v2347_v52 = vld [vmem:[#allocation4 + $0xb0] ss:$12 sps:$4 sm:$0xff]  }
  0x48   :  { %275 = vmatprep.subr.bf16.mxu0 %v2296_v11  ;;  %2133 = vmatpush3.bf16.msra.mxu1 %v2314_v17  ;;  %v2344_v45 = vld [vmem:[#allocation4 + $0x68] ss:$12 sps:$4 sm:$0xff]   ;;  %v2345_v49 = vld [vmem:[#allocation4 + $0x80] ss:$12 sps:$4 sm:$0xff]   ;;  %v2346_v51 = vld [vmem:[#allocation4 + $0x98] ss:$12 sps:$4 sm:$0xff]  }
  0x49   :  { %2134 = vmatprep.subr.bf16.mxu1 %v2549_v0  ;;  %v2338_v47 = vld [vmem:[#allocation4 + $0xa8] ss:$12 sps:$4 sm:$0xff]   ;;  %v2758_v53 = vld [vmem:[%s2934_s2] sm:$0xff]   ;;  %v125_v60 = vshrl.u32 %v124_v59, 7  ;;  %vm1094_vm1 = vcmask 122880   ;;  %vm1191_vm2 = vcmask 130048  }
  0x4a   :  { %v2763_v54 = vld [vmem:[%s2934_s2 + $0x8] sm:$0xff]   ;;  %v381_v62 = vld [vmem:[%s2938_s6 + $0x3] sm:$0x7]  ;;  %v122_v63 = vld [vmem:[%s2938_s6] sm:$0x7]  ;;  %vm1545_vm3 = vcmask 1041409  }
  0x4b   :  { %276 = vmatpush1.bf16.msra.mxu0 %v2298_v13  ;;  %v2769_v61 = vsub.s32 0, %v125_v60  ;;  %v2777_v2 = vsub.s32 1, %v125_v60  ;;  %vm1548_vm4 = vcmask 1042434   ;;  %vm1551_vm5 = vcmask 1043459  }
  0x4c   :  { %277 = vmatprep.subr.bf16.mxu0 %v2299_v15  ;;  %2135 = vmatpush3.bf16.msra.mxu1 %v2318_v20  ;;  %vm1554_vm6 = vcmask 1044484   ;;  %vm1557_vm7 = vcmask 1045509   ;;  %vm1560_vm8 = vcmask 1046534   ;;  %vm1563_vm9 = vcmask 1047559  }
  0x4d   :  { %2136 = vmatprep.subr.bf16.mxu1 %v2549_v0  ;;  %v127_v3 = vrot.slane %v122_v63, %v2769_v61  ;;  %v386_v4 = vrot.slane %v381_v62, %v2769_v61  ;;  %v131_v5 = vrot.slane %v122_v63, %v2777_v2  ;;  %v390_v6 = vrot.slane %v381_v62, %v2777_v2 }
  0x4f   :  { %278 = vmatpush1.bf16.msra.mxu0 %v2301_v16  ;;  %v2262_v7 = vadd.f32 %v386_v4, %v127_v3  ;;  %v2264_v9 = vadd.f32 %v390_v6, %v131_v5  ;;  %v2819_v3 = vld [vmem:[%s2934_s2 + $0x28] sm:$0xff]  }
  0x50   :  { %279 = vmatprep.subr.bf16.mxu0 %v2302_v18  ;;  %2137 = vmatpush3.bf16.msra.mxu1 %v2322_v23  ;;  %v134_v23 = vsub.s32 2, %v125_v60 }
  0x51   :  { %2138 = vmatprep.subr.bf16.mxu1 %v2549_v0 }
  0x53   :  { %280 = vmatpush1.bf16.msra.mxu0 %v2305_v19 }
  0x54   :  { %281 = vmatprep.subr.bf16.mxu0 %v2306_v21  ;;  %2139 = vmatpush3.bf16.msra.mxu1 %v2326_v27 }
  0x55   :  { %2140 = vmatprep.subr.bf16.mxu1 %v2549_v0 }
  0x57   :  { %282 = vmatpush1.bf16.msra.mxu0 %v2309_v22 }
  0x58   :  { %526 = vmatprep.subr.bf16.mxu0 %v2313_v24  ;;  %2141 = vmatpush3.bf16.msra.mxu1 %v2330_v30  ;;  %v394_v24 = vrot.slane %v381_v62, %v134_v23  ;;  %v2813_v62 = vld [vmem:[%s2934_s2 + $0x20] sm:$0xff]  }
  0x59   :  { %2146 = vmatprep.subr.bf16.mxu1 %v2549_v0 }
  0x5a   :  { %300 = vmatmul.mubr.bf16.vlgmr.msra.gmra.mrb[0].mxu0 %v88_v26 }
  0x5b   :  { %527 = vmatpush1.bf16.msra.mxu0 %v2311_v25  ;;  %558 = vmatprep.mubr.bf16.mxu0 %v2550_v1 }
  0x5c   :  { %528 = vmatprep.subr.bf16.mxu0 %v2317_v28  ;;  %2143 = vmatmul.mubr.bf16.vlgmr.msra.gmra.mrb[0].mxu1 %v88_v26  ;;  %v135_v26 = vrot.slane %v122_v63, %v134_v23 }
  0x5d   :  { %2147 = vmatpush3.bf16.msra.mxu1 %v2337_v34  ;;  %2162 = vmatprep.mubr.msk.bf16.mxu1 %vm2551_vm0, %v2549_v0 }
  0x5e   :  { %2148 = vmatprep.subr.bf16.mxu1 %v2549_v0 }
  0x5f   :  { %529 = vmatpush1.bf16.msra.mxu0 %v2315_v29 }
  0x60   :  { %530 = vmatprep.subr.bf16.mxu0 %v2321_v31 }
  0x61   :  { %2149 = vmatpush3.bf16.msra.mxu1 %v2341_v36 }
  0x62   :  { %2150 = vmatprep.subr.bf16.mxu1 %v2549_v0 }
  0x63   :  { %531 = vmatpush1.bf16.msra.mxu0 %v2319_v32 }
  0x64   :  { %532 = vmatprep.subr.bf16.mxu0 %v2325_v33  ;;  %v2552_v33 = vmov 1966171168  }
  0x65   :  { %2151 = vmatpush3.bf16.msra.mxu1 %v2342_v39  ;;  %v647_v34 = vunpack.c.l.s4 %v2552_v33 }
  0x66   :  { %2152 = vmatprep.subr.bf16.mxu1 %v2549_v0 }
  0x67   :  { %533 = vmatpush1.bf16.msra.mxu0 %v2323_v35 }
  0x68   :  { %534 = vmatprep.subr.bf16.mxu0 %v2329_v37  ;;  %v648_v37 = vunpack.c.0.s8 %v647_v34 }
  0x69   :  { %2153 = vmatpush3.bf16.msra.mxu1 %v2343_v42 }
  0x6a   :  { %2154 = vmatprep.subr.bf16.mxu1 %v2549_v0  ;;  %v651_v42 = vsub.s32 %v648_v37, %v125_v60 }
  0x6b   :  { %535 = vmatpush1.bf16.msra.mxu0 %v2327_v38 }
  0x6c   :  { %536 = vmatprep.subr.bf16.mxu0 %v2333_v40 }
  0x6d   :  { %2155 = vmatpush3.bf16.msra.mxu1 %v2344_v45 }
  0x6e   :  { %2156 = vmatprep.subr.bf16.mxu1 %v2549_v0 }
  0x6f   :  { %537 = vmatpush1.bf16.msra.mxu0 %v2331_v41 }
  0x70   :  { %538 = vmatprep.subr.bf16.mxu0 %v2336_v43 }
  0x71   :  { %2157 = vmatpush3.bf16.msra.mxu1 %v2345_v49 }
  0x72   :  { %2158 = vmatprep.subr.bf16.mxu1 %v2549_v0 }
  0x73   :  { %539 = vmatpush1.bf16.msra.mxu0 %v2334_v44 }
  0x74   :  { %540 = vmatprep.subr.bf16.mxu0 %v2340_v46 }
  0x75   :  { %2159 = vmatpush3.bf16.msra.mxu1 %v2346_v51 }
  0x76   :  { %2160 = vmatprep.subr.bf16.mxu1 %v2549_v0 }
  0x77   :  { %541 = vmatpush1.bf16.msra.mxu0 %v2338_v47 }
  0x78   :  { %2166 = vmatprep.subr.bf16.mxu0 %v2549_v0 }
  0x79   :  { %2161 = vmatpush3.bf16.msra.mxu1 %v2347_v52 }
  0x7a   :  { %559 = vmatmul.mubr.bf16.vlgmr.msra.gmra.mrb[0].mxu0 %v348_v50  ;;  %2172 = vmatprep.subr.bf16.mxu1 %v2549_v0 }
  0x7b   :  { %2168 = vmatprep.mubr.msk.bf16.mxu0 %vm2551_vm0, %v2549_v0 }
  0x7c   :  { %2163 = vmatmul.mubr.bf16.vlgmr.msra.gmra.mrb[4].mxu1 %v348_v50 }
  0x7d   :  { %2174 = vmatprep.mubr.msk.bf16.mxu1 %vm2551_vm0, %v2549_v0 }
  0x80   :  { %2167 = vmatpush3.bf16.xpose.msra.mxu0 %v2758_v53 }
  0x81   :  { %2178 = vmatprep.subr.bf16.mxu0 %v2549_v0 }
  0x82   :  { %2173 = vmatpush3.bf16.xpose.msra.mxu1 %v2763_v54 }
  0x83   :  { %2184 = vmatprep.subr.bf16.mxu1 %v2549_v0 }
 0x12f   :  { %v342_v55 = vpop.f32.mrb[0].mxu1 }
 0x130   :  { %v2144_v56 = vpop.f32.mrb[1].mxu1  ;;  %v343_v30 = vadd.f32 %v342_v55, %v135_v26  ;;  %v2799_v55 = vld [vmem:[%s2934_s2 + $0x18] sm:$0xff]  }
 0x131   :  { %v345_v57 = vpop.f32.mrb[2].mxu1 }
 0x132   :  { %v2145_v58 = vpop.f32.mrb[3].mxu1 }
 0x14d   :  { %v560_v8 = vpop.f32.mrb[0].mxu0 }
 0x14e   :  { %v2263_v10 = vadd.f32 %v2262_v7, %v560_v8  ;;  %v562_v11 = vpop.f32.mrb[1].mxu0 }
 0x14f   :  { %v564_v12 = vpop.f32.mrb[2].mxu0  ;;  %v2265_v15 = vadd.f32 %v2264_v9, %v562_v11  ;;  %v601_v17 = vpop.f32.mrb[4].mxu1  ;;  %v2833_v9 = vld [vmem:[%s2934_s2 + $0x30] sm:$0xff]   ;;  %v2839_v11 = vld [vmem:[%s2934_s2 + $0x38] sm:$0xff]  }
 0x150   :  { %v1999_v13 = vmul.f32 -1.442695, %v2263_v10  ;;  %v565_v14 = vpop.f32.mrb[3].mxu0  ;;  %v2164_v18 = vpop.f32.mrb[5].mxu1  ;;  %v602_v28 = vadd.f32 %v601_v17, %v394_v24 }
 0x151   :  { %v2000_v16 = vmul.f32 -1.442695, %v2265_v15  ;;  %v604_v19 = vpop.f32.mrb[6].mxu1 }
 0x152   :  { %2396 = vpow2.f32 %v1999_v13  ;;  %v2165_v20 = vpop.f32.mrb[7].mxu1 }
 0x153   :  { %2398 = vpow2.f32 %v2000_v16 }
 0x15c   :  { %v2397_v21 = vpop.eup %2396 }
 0x15d   :  { %v611_v22 = vadd.f32 1.0, %v2397_v21  ;;  %v2399_v25 = vpop.eup %2398 }
 0x15e   :  { %v618_v27 = vadd.f32 1.0, %v2399_v25 }
 0x15f   :  { %2400 = vrcp.f32 %v611_v22 }
 0x160   :  { %2402 = vrcp.f32 %v618_v27 }
 0x169   :  { %v2401_v29 = vpop.eup %2400 }
 0x16a   :  { %v621_v31 = vmul.f32 %v2401_v29, %v602_v28  ;;  %v2403_v35 = vpop.eup %2402 }
 0x16b   :  { %v624_v36 = vsub.f32 1.0, %v2403_v35  ;;  %v626_v39 = vmul.f32 %v2403_v35, %v2742_v48  ;;  %v2793_v48 = vld [vmem:[%s2934_s2 + $0x10] sm:$0xff]  }
 0x16c   :  { %v622_v32 = vadd.f32 %v621_v31, %v343_v30 }
 0x16e   :  { %2404 = vtanh.f32 %v622_v32 }
 0x178   :  { %v2405_v38 = vpop.eup %2404 }
 0x179   :  { %v625_v40 = vmul.f32 %v2405_v38, %v624_v36 }
 0x17b   :  { %v627_v41 = vadd.f32 %v626_v39, %v625_v40 }
 0x17d   :  { %1928 = vst [vmem:[%s2942_s10] sm:$0xff] %v627_v41  ;;  %v2787_v43 = vpack.c.bf16 %v627_v41, %v627_v41 }
 0x17f   :  { %v652_v44 = vrot.slane %v2787_v43, %v651_v42 }
 0x181   :  { %v660_v45 = vrot.slane %v652_v44, %v651_v42  ;;  %v653_v46 = vcombine.high %v652_v44, %v652_v44 }
 0x183   :  { %v2001_v47 = vpack.i.b16 %v660_v45, %v660_v45  ;;  %v671_v49 = vunpack.i.h.s16 %v660_v45  ;;  %v667_v50 = vrot.slane %v653_v46, %v651_v42  ;;  %v668_v60 = vcombine.high %v660_v45, %v660_v45 }
 0x185   :  { %v682_v51 = vrot.slane %v2001_v47, %v2769_v61  ;;  %v730_v52 = vpack.i.b16 %v671_v49, %v671_v49  ;;  %v673_v57 = vunpack.i.h.s16 %v667_v50  ;;  %v2004_v58 = vpack.i.b16 %v667_v50, %v667_v50 }
 0x186   :  { %v675_v5 = vunpack.i.h.s16 %v668_v60  ;;  %v2007_v6 = vpack.i.b16 %v668_v60, %v668_v60  ;;  %v669_v8 = vcombine.high %v667_v50, %v667_v50 }
 0x187   :  { %2169 = vmatmul.mubr.bf16.vlgmr.msra.gmra.mrb[4].mxu0 %v682_v51  ;;  %v734_v56 = vrot.slane %v730_v52, %v2769_v61  ;;  %v834_v59 = vpack.i.b16 %v673_v57, %v673_v57  ;;  %v786_v63 = vrot.slane %v2004_v58, %v2769_v61 }
 0x188   :  { %2179 = vmatpush3.bf16.xpose.msra.mxu0 %v2793_v48  ;;  %2180 = vmatprep.mubr.msk.bf16.mxu0 %vm2551_vm0, %v2549_v0  ;;  %v938_v7 = vpack.i.b16 %v675_v5, %v675_v5  ;;  %v890_v10 = vrot.slane %v2007_v6, %v2769_v61  ;;  %v677_v13 = vunpack.i.h.s16 %v669_v8  ;;  %v2010_v14 = vpack.i.b16 %v669_v8, %v669_v8 }
 0x189   :  { %2175 = vmatmul.mubr.bf16.vlgmr.msra.gmra.mrb[8].mxu1 %v734_v56  ;;  %2190 = vmatprep.subr.bf16.mxu0 %v2549_v0  ;;  %v838_v4 = vrot.slane %v834_v59, %v2769_v61 }
 0x18a   :  { %2185 = vmatpush3.bf16.xpose.msra.mxu1 %v2799_v55  ;;  %2186 = vmatprep.mubr.msk.bf16.mxu1 %vm2551_vm0, %v2549_v0  ;;  %v942_v12 = vrot.slane %v938_v7, %v2769_v61  ;;  %v1042_v15 = vpack.i.b16 %v677_v13, %v677_v13  ;;  %v994_v16 = vrot.slane %v2010_v14, %v2769_v61 }
 0x18b   :  { %2196 = vmatprep.subr.bf16.mxu1 %v2549_v0 }
 0x18c   :  { %v1046_v17 = vrot.slane %v1042_v15, %v2769_v61 }
 0x18f   :  { %2181 = vmatmul.mubr.bf16.vlgmr.msra.gmra.mrb[8].mxu0 %v786_v63 }
 0x190   :  { %2191 = vmatpush3.bf16.xpose.msra.mxu0 %v2813_v62  ;;  %2192 = vmatprep.mubr.msk.bf16.mxu0 %vm2551_vm0, %v2549_v0 }
 0x191   :  { %2187 = vmatmul.mubr.bf16.vlgmr.msra.gmra.mrb[12].mxu1 %v838_v4  ;;  %2202 = vmatprep.subr.bf16.mxu0 %v2549_v0 }
 0x192   :  { %2197 = vmatpush3.bf16.xpose.msra.mxu1 %v2819_v3  ;;  %2198 = vmatprep.mubr.msk.bf16.mxu1 %vm2551_vm0, %v2549_v0 }
 0x193   :  { %2208 = vmatprep.subr.bf16.mxu1 %v2549_v0 }
 0x197   :  { %2193 = vmatmul.mubr.bf16.vlgmr.msra.gmra.mrb[12].mxu0 %v890_v10 }
 0x198   :  { %2203 = vmatpush3.bf16.xpose.msra.mxu0 %v2833_v9  ;;  %2204 = vmatprep.mubr.msk.bf16.mxu0 %vm2551_vm0, %v2549_v0 }
 0x199   :  { %2199 = vmatmul.mubr.bf16.vlgmr.msra.gmra.mrb[16].mxu1 %v942_v12  ;;  %2214 = vmatprep.subr.bf16.mxu0 %v2549_v0 }
 0x19a   :  { %2209 = vmatpush3.bf16.xpose.msra.mxu1 %v2839_v11  ;;  %2210 = vmatprep.mubr.msk.bf16.mxu1 %vm2551_vm0, %v2549_v0 }
 0x19b   :  { %2220 = vmatprep.subr.bf16.mxu1 %v2549_v0 }
 0x19f   :  { %2205 = vmatmul.mubr.bf16.vlgmr.msra.gmra.mrb[16].mxu0 %v994_v16 }
 0x1a0   :  { %2215 = vmatpush3.bf16.msra.mxu0 %v2758_v53  ;;  %2216 = vmatprep.mubr.msk.bf16.mxu0 %vm2551_vm0, %v2549_v0 }
 0x1a1   :  { %2211 = vmatmul.mubr.bf16.vlgmr.msra.gmra.mrb[20].mxu1 %v1046_v17  ;;  %2226 = vmatprep.subr.bf16.mxu0 %v2549_v0 }
 0x1a2   :  { %2221 = vmatpush3.bf16.msra.mxu1 %v2763_v54  ;;  %2222 = vmatprep.mubr.msk.bf16.mxu1 %vm2551_vm0, %v2549_v0 }
 0x1a3   :  { %2232 = vmatprep.subr.bf16.mxu1 %v2549_v0 }
 0x25a   :  { %v724_v18 = vpop.f32.mrb[4].mxu0 }
 0x25b   :  { %v2170_v19 = vpop.f32.mrb[5].mxu0  ;;  %v1095_v20 = vsel %vm1094_vm1, %v724_v18, -inf }
 0x25c   :  { %v776_v21 = vpop.f32.mrb[8].mxu1  ;;  %1096 = vmax.xlane.f32.xlu0 %v1095_v20  ;;  %v727_v53 = vpop.f32.mrb[6].mxu0 }
 0x25d   :  { %v2171_v22 = vpop.f32.mrb[7].mxu0  ;;  %v2176_v23 = vpop.f32.mrb[9].mxu1  ;;  %v1098_v26 = vsel %vm1094_vm1, %v776_v21, -inf }
 0x25e   :  { %v779_v24 = vpop.f32.mrb[10].mxu1 }
 0x25f   :  { %v2177_v25 = vpop.f32.mrb[11].mxu1 }
 0x260   :  { %1099 = vmax.xlane.f32.xlu0 %v1098_v26 }
 0x262   :  { %v828_v54 = vpop.f32.mrb[8].mxu0 }
 0x263   :  { %v2182_v27 = vpop.f32.mrb[9].mxu0  ;;  %v1101_v28 = vsel %vm1094_vm1, %v828_v54, -inf }
 0x264   :  { %v880_v29 = vpop.f32.mrb[12].mxu1  ;;  %1102 = vmax.xlane.f32.xlu1 %v1101_v28  ;;  %v831_v30 = vpop.f32.mrb[10].mxu0 }
 0x265   :  { %v2183_v31 = vpop.f32.mrb[11].mxu0  ;;  %v2188_v32 = vpop.f32.mrb[13].mxu1  ;;  %v1104_v35 = vsel %vm1094_vm1, %v880_v29, -inf }
 0x266   :  { %v883_v33 = vpop.f32.mrb[14].mxu1 }
 0x267   :  { %v2189_v34 = vpop.f32.mrb[15].mxu1 }
 0x268   :  { %1105 = vmax.xlane.f32.xlu1 %v1104_v35 }
 0x26a   :  { %v932_v36 = vpop.f32.mrb[12].mxu0 }
 0x26b   :  { %v2194_v37 = vpop.f32.mrb[13].mxu0  ;;  %v1107_v38 = vsel %vm1094_vm1, %v932_v36, -inf }
 0x26c   :  { %v984_v39 = vpop.f32.mrb[16].mxu1  ;;  %1108 = vmax.xlane.f32.xlu0 %v1107_v38  ;;  %v935_v40 = vpop.f32.mrb[14].mxu0 }
 0x26d   :  { %v2195_v41 = vpop.f32.mrb[15].mxu0  ;;  %v2200_v42 = vpop.f32.mrb[17].mxu1  ;;  %v1110_v44 = vsel %vm1094_vm1, %v984_v39, -inf }
 0x26e   :  { %v987_v45 = vpop.f32.mrb[18].mxu1  ;;  %1111 = vmax.xlane.f32.xlu1 %v1110_v44 }
 0x26f   :  { %v2201_v46 = vpop.f32.mrb[19].mxu1 }
 0x272   :  { %v1036_v47 = vpop.f32.mrb[16].mxu0 }
 0x273   :  { %v2206_v49 = vpop.f32.mrb[17].mxu0  ;;  %v1113_v50 = vsel %vm1094_vm1, %v1036_v47, -inf }
 0x274   :  { %v1088_v51 = vpop.f32.mrb[20].mxu1  ;;  %1114 = vmax.xlane.f32.xlu0 %v1113_v50  ;;  %v1039_v52 = vpop.f32.mrb[18].mxu0 }
 0x275   :  { %v2207_v56 = vpop.f32.mrb[19].mxu0  ;;  %v2212_v57 = vpop.f32.mrb[21].mxu1  ;;  %v1116_v58 = vsel %vm1094_vm1, %v1088_v51, -inf }
 0x276   :  { %v1091_v59 = vpop.f32.mrb[22].mxu1  ;;  %1117 = vmax.xlane.f32.xlu1 %v1116_v58 }
 0x277   :  { %v2213_v60 = vpop.f32.mrb[23].mxu1 }
 0x2e9   :  { %v1097_v63 = vpop.xlane.xlu0 %1096 }
 0x2ea   :  { %v1119_v4 = vsub.f32 %v724_v18, %v1097_v63 }
 0x2ec   :  { %v1127_v5 = vmul.f32 1.442695, %v1119_v4 }
 0x2ed   :  { %v1100_v6 = vpop.xlane.xlu0 %1099 }
 0x2ee   :  { %2406 = vpow2.f32 %v1127_v5  ;;  %v1120_v7 = vsub.f32 %v776_v21, %v1100_v6 }
 0x2f0   :  { %v1129_v8 = vmul.f32 1.442695, %v1120_v7 }
 0x2f1   :  { %v1103_v10 = vpop.xlane.xlu1 %1102 }
 0x2f2   :  { %2408 = vpow2.f32 %v1129_v8  ;;  %v1121_v12 = vsub.f32 %v828_v54, %v1103_v10 }
 0x2f4   :  { %v1131_v13 = vmul.f32 1.442695, %v1121_v12 }
 0x2f5   :  { %v1106_v14 = vpop.xlane.xlu1 %1105 }
 0x2f6   :  { %2410 = vpow2.f32 %v1131_v13  ;;  %v1122_v15 = vsub.f32 %v880_v29, %v1106_v14 }
 0x2f8   :  { %v2407_v16 = vpop.eup %2406  ;;  %v1133_v17 = vmul.f32 1.442695, %v1122_v15 }
 0x2f9   :  { %v1109_v19 = vpop.xlane.xlu0 %1108  ;;  %v1143_v20 = vsel %vm1094_vm1, %v2407_v16, 0.0 }
 0x2fa   :  { %2412 = vpow2.f32 %v1133_v17  ;;  %v1123_v53 = vsub.f32 %v932_v36, %v1109_v19  ;;  %1144 = vadd.xlane.f32.xlu0 %v1143_v20  ;;  %v2356_v20 = vld [vmem:[#allocation7 + $0x40] sm:$0xff]  }
 0x2fb   :  { %v1112_v18 = vpop.xlane.xlu1 %1111 }
 0x2fc   :  { %v2409_v22 = vpop.eup %2408  ;;  %v1135_v23 = vmul.f32 1.442695, %v1123_v53  ;;  %v1124_v21 = vsub.f32 %v984_v39, %v1112_v18  ;;  %v2357_v53 = vld [vmem:[#allocation7] sm:$0xff]   ;;  %v2358_v18 = vld [vmem:[#allocation7 + $0x48] sm:$0xff]  }
 0x2fd   :  { %v1146_v24 = vsel %vm1094_vm1, %v2409_v22, 0.0 }
 0x2fe   :  { %2414 = vpow2.f32 %v1135_v23  ;;  %v1137_v25 = vmul.f32 1.442695, %v1124_v21  ;;  %1147 = vadd.xlane.f32.xlu1 %v1146_v24  ;;  %v2362_v23 = vld [vmem:[#allocation7 + $0x58] sm:$0xff]   ;;  %v2364_v24 = vld [vmem:[#allocation7 + $0x60] sm:$0xff]  }
 0x2ff   :  { %v2363_v21 = vld [vmem:[#allocation7 + $0x18] sm:$0xff]  }
 0x300   :  { %v2411_v26 = vpop.eup %2410  ;;  %2416 = vpow2.f32 %v1137_v25  ;;  %v2365_v25 = vld [vmem:[#allocation7 + $0x20] sm:$0xff]  }
 0x301   :  { %v1115_v54 = vpop.xlane.xlu0 %1114  ;;  %v1149_v27 = vsel %vm1094_vm1, %v2411_v26, 0.0 }
 0x302   :  { %v1125_v28 = vsub.f32 %v1036_v47, %v1115_v54  ;;  %1150 = vadd.xlane.f32.xlu0 %v1149_v27  ;;  %v2368_v54 = vld [vmem:[#allocation7 + $0x70] sm:$0xff]  }
 0x303   :  { %v1118_v29 = vpop.xlane.xlu1 %1117  ;;  %v2369_v27 = vld [vmem:[#allocation7 + $0x30] sm:$0xff]  }
 0x304   :  { %v2413_v30 = vpop.eup %2412  ;;  %v1139_v31 = vmul.f32 1.442695, %v1125_v28  ;;  %v1126_v32 = vsub.f32 %v1088_v51, %v1118_v29  ;;  %v2370_v28 = vld [vmem:[#allocation7 + $0x78] sm:$0xff]  }
 0x305   :  { %v1152_v33 = vsel %vm1094_vm1, %v2413_v30, 0.0  ;;  %v2371_v29 = vld [vmem:[#allocation7 + $0x38] sm:$0xff]  }
 0x306   :  { %2418 = vpow2.f32 %v1139_v31  ;;  %v1141_v34 = vmul.f32 1.442695, %v1126_v32  ;;  %1153 = vadd.xlane.f32.xlu1 %v1152_v33  ;;  %v2374_v31 = vld [vmem:[#allocation9 + $0x4] ss:$8 sps:$4 sm:$0xff]   ;;  %v2377_v32 = vld [vmem:[#allocation9 + $0x14] ss:$8 sps:$4 sm:$0xff]  }
 0x307   :  { %v2375_v33 = vld [vmem:[#allocation9 + $0x10] ss:$8 sps:$4 sm:$0xff]  }
 0x308   :  { %v2415_v35 = vpop.eup %2414  ;;  %2420 = vpow2.f32 %v1141_v34 }
 0x309   :  { %v1155_v36 = vsel %vm1094_vm1, %v2415_v35, 0.0 }
 0x30a   :  { %v2417_v37 = vpop.eup %2416  ;;  %1156 = vadd.xlane.f32.xlu0 %v1155_v36 }
 0x30b   :  { %v1158_v38 = vsel %vm1094_vm1, %v2417_v37, 0.0 }
 0x30c   :  { %1159 = vadd.xlane.f32.xlu1 %v1158_v38 }
 0x310   :  { %v2419_v39 = vpop.eup %2418 }
 0x311   :  { %v1161_v40 = vsel %vm1094_vm1, %v2419_v39, 0.0 }
 0x312   :  { %v2875_v41 = vpop.eup %2420  ;;  %1162 = vadd.xlane.f32.xlu0 %v1161_v40 }
 0x313   :  { %v1164_v42 = vsel %vm1094_vm1, %v2875_v41, 0.0 }
 0x314   :  { %1165 = vadd.xlane.f32.xlu1 %v1164_v42 }
 0x387   :  { %v1145_v44 = vpop.xlane.xlu0 %1144 }
 0x388   :  { %2422 = vrcp.f32 %v1145_v44 }
 0x38b   :  { %v1148_v45 = vpop.xlane.xlu1 %1147 }
 0x38c   :  { %2424 = vrcp.f32 %v1148_v45 }
 0x38f   :  { %v1151_v46 = vpop.xlane.xlu0 %1150 }
 0x390   :  { %2426 = vrcp.f32 %v1151_v46 }
 0x392   :  { %v2423_v47 = vpop.eup %2422 }
 0x393   :  { %v1175_v49 = vmul.f32 %v2423_v47, %v2407_v16  ;;  %v1154_v50 = vpop.xlane.xlu1 %1153 }
 0x394   :  { %2428 = vrcp.f32 %v1154_v50 }
 0x395   :  { %v1183_v51 = vpack.c.bf16 %v1175_v49, %v1175_v49 }
 0x396   :  { %v2425_v52 = vpop.eup %2424 }
 0x397   :  { %v1176_v56 = vmul.f32 %v2425_v52, %v2409_v22  ;;  %2217 = vmatmul.mubr.msk.bf16.vlgmr.msra.gmra.mrb[20].mxu0 %vm1191_vm2, %v1183_v51  ;;  %v1157_v57 = vpop.xlane.xlu0 %1156  ;;  %v2359_v22 = vld [vmem:[#allocation7 + $0x8] sm:$0xff]  }
 0x398   :  { %2430 = vrcp.f32 %v1157_v57  ;;  %2227 = vmatpush3.bf16.msra.mxu0 %v2793_v48  ;;  %2228 = vmatprep.mubr.msk.bf16.mxu0 %vm2551_vm0, %v2549_v0 }
 0x399   :  { %v1160_v58 = vpop.xlane.xlu1 %1159  ;;  %v1184_v59 = vpack.c.bf16 %v1176_v56, %v1176_v56  ;;  %2238 = vmatprep.subr.bf16.mxu0 %v2549_v0 }
 0x39a   :  { %v2427_v60 = vpop.eup %2426  ;;  %2432 = vrcp.f32 %v1160_v58 }
 0x39b   :  { %v1177_v63 = vmul.f32 %v2427_v60, %v2411_v26  ;;  %2223 = vmatmul.mubr.msk.bf16.vlgmr.msra.gmra.mrb[24].mxu1 %vm1191_vm2, %v1184_v59  ;;  %v2367_v26 = vld [vmem:[#allocation7 + $0x28] sm:$0xff]  }
 0x39c   :  { %2233 = vmatpush3.bf16.msra.mxu1 %v2799_v55  ;;  %2234 = vmatprep.mubr.msk.bf16.mxu1 %vm2551_vm0, %v2549_v0 }
 0x39d   :  { %v1185_v4 = vpack.c.bf16 %v1177_v63, %v1177_v63  ;;  %2244 = vmatprep.subr.bf16.mxu1 %v2549_v0 }
 0x39e   :  { %v2429_v48 = vpop.eup %2428 }
 0x39f   :  { %v1178_v5 = vmul.f32 %v2429_v48, %v2413_v30  ;;  %2229 = vmatmul.mubr.msk.bf16.vlgmr.msra.gmra.mrb[24].mxu0 %vm1191_vm2, %v1185_v4  ;;  %v1163_v6 = vpop.xlane.xlu0 %1162  ;;  %v2372_v30 = vld [vmem:[#allocation9] ss:$8 sps:$4 sm:$0xff]  }
 0x3a0   :  { %2434 = vrcp.f32 %v1163_v6  ;;  %2239 = vmatpush3.bf16.msra.mxu0 %v2813_v62  ;;  %2240 = vmatprep.mubr.msk.bf16.mxu0 %vm2551_vm0, %v2549_v0 }
 0x3a1   :  { %v1166_v7 = vpop.xlane.xlu1 %1165  ;;  %v1186_v8 = vpack.c.bf16 %v1178_v5, %v1178_v5  ;;  %2250 = vmatprep.subr.bf16.mxu0 %v2549_v0 }
 0x3a2   :  { %v2431_v55 = vpop.eup %2430  ;;  %2436 = vrcp.f32 %v1166_v7 }
 0x3a3   :  { %v1179_v10 = vmul.f32 %v2431_v55, %v2415_v35  ;;  %2235 = vmatmul.mubr.msk.bf16.vlgmr.msra.gmra.mrb[28].mxu1 %vm1191_vm2, %v1186_v8 }
 0x3a4   :  { %v2433_v12 = vpop.eup %2432  ;;  %2245 = vmatpush3.bf16.msra.mxu1 %v2819_v3  ;;  %2246 = vmatprep.mubr.msk.bf16.mxu1 %vm2551_vm0, %v2549_v0 }
 0x3a5   :  { %v1180_v13 = vmul.f32 %v2433_v12, %v2417_v37  ;;  %v1187_v62 = vpack.c.bf16 %v1179_v10, %v1179_v10  ;;  %2256 = vmatprep.subr.bf16.mxu1 %v2549_v0 }
 0x3a7   :  { %2241 = vmatmul.mubr.msk.bf16.vlgmr.msra.gmra.mrb[28].mxu0 %vm1191_vm2, %v1187_v62  ;;  %v1188_v14 = vpack.c.bf16 %v1180_v13, %v1180_v13 }
 0x3a8   :  { %2251 = vmatpush3.bf16.msra.mxu0 %v2833_v9  ;;  %2252 = vmatprep.mubr.msk.bf16.mxu0 %vm2551_vm0, %v2549_v0 }
 0x3a9   :  { %2104 = vmatprep.subr.bf16.mxu0 %v2356_v20 }
 0x3aa   :  { %v2435_v15 = vpop.eup %2434 }
 0x3ab   :  { %v1181_v16 = vmul.f32 %v2435_v15, %v2419_v39  ;;  %2247 = vmatmul.mubr.msk.bf16.vlgmr.msra.gmra.mrb[32].mxu1 %vm1191_vm2, %v1188_v14 }
 0x3ac   :  { %v2437_v3 = vpop.eup %2436  ;;  %2257 = vmatpush3.bf16.msra.mxu1 %v2839_v11  ;;  %2258 = vmatprep.mubr.msk.bf16.mxu1 %vm2551_vm0, %v2549_v0  ;;  %v2360_v11 = vld [vmem:[#allocation7 + $0x50] sm:$0xff]  }
 0x3ad   :  { %v1182_v17 = vmul.f32 %v2437_v3, %v2875_v41  ;;  %v1189_v19 = vpack.c.bf16 %v1181_v16, %v1181_v16  ;;  %v2361_v0 = vld [vmem:[#allocation7 + $0x10] sm:$0xff]   ;;  %1855 = vmatprep.subr.bf16.mxu1 %v2374_v31 }
 0x3af   :  { %2253 = vmatmul.mubr.msk.bf16.vlgmr.msra.gmra.mrb[32].mxu0 %vm1191_vm2, %v1189_v19  ;;  %v1190_v9 = vpack.c.bf16 %v1182_v17, %v1182_v17 }
 0x3b0   :  { %2105 = vmatpush3.bf16.msra.mxu0 %v2357_v53 }
 0x3b1   :  { %2106 = vmatprep.subr.bf16.mxu0 %v2358_v18 }
 0x3b3   :  { %2259 = vmatmul.mubr.msk.bf16.vlgmr.msra.gmra.mrb[36].mxu1 %vm1191_vm2, %v1190_v9 }
 0x3b4   :  { %1887 = vmatprep.mubr.bf16.mxu1 %v2550_v1  ;;  %2107 = vmatpush3.bf16.msra.mxu0 %v2359_v22  ;;  %v2366_v1 = vld [vmem:[#allocation7 + $0x68] sm:$0xff]  }
 0x3b5   :  { %2108 = vmatprep.subr.bf16.mxu0 %v2360_v11  ;;  %1856 = vmatpush1.bf16.msra.mxu1 %v2372_v30  ;;  %v2395_v30 = vld [vmem:[#allocation9 + $0x74] ss:$8 sps:$4 sm:$0xff]  }
 0x3b6   :  { %1857 = vmatprep.subr.bf16.mxu1 %v2377_v32  ;;  %v2021_v32 = vld [vmem:[%s2938_s6 + $0x6] ss:$0 sm:$0xff]  ;;  %s2553_s6 = smov [#allocation10]  }
 0x3b8   :  { %2109 = vmatpush3.bf16.msra.mxu0 %v2361_v0 }
 0x3b9   :  { %2110 = vmatprep.subr.bf16.mxu0 %v2362_v23  ;;  %1858 = vmatpush1.bf16.msra.mxu1 %v2375_v33  ;;  %v2380_v23 = vld [vmem:[#allocation9 + $0x24] ss:$8 sps:$4 sm:$0xff]  }
 0x3ba   :  { %1859 = vmatprep.subr.bf16.mxu1 %v2380_v23 }
 0x3bc   :  { %2111 = vmatpush3.bf16.msra.mxu0 %v2363_v21  ;;  %v2378_v21 = vld [vmem:[#allocation9 + $0x20] ss:$8 sps:$4 sm:$0xff]  }
 0x3bd   :  { %2112 = vmatprep.subr.bf16.mxu0 %v2364_v24  ;;  %1860 = vmatpush1.bf16.msra.mxu1 %v2378_v21  ;;  %v2383_v24 = vld [vmem:[#allocation9 + $0x34] ss:$8 sps:$4 sm:$0xff]  }
 0x3be   :  { %1861 = vmatprep.subr.bf16.mxu1 %v2383_v24 }
 0x3c0   :  { %2113 = vmatpush3.bf16.msra.mxu0 %v2365_v25  ;;  %v2381_v25 = vld [vmem:[#allocation9 + $0x30] ss:$8 sps:$4 sm:$0xff]  }
 0x3c1   :  { %2114 = vmatprep.subr.bf16.mxu0 %v2366_v1  ;;  %1862 = vmatpush1.bf16.msra.mxu1 %v2381_v25  ;;  %v2386_v1 = vld [vmem:[#allocation9 + $0x44] ss:$8 sps:$4 sm:$0xff]  }
 0x3c2   :  { %1863 = vmatprep.subr.bf16.mxu1 %v2386_v1 }
 0x3c4   :  { %2115 = vmatpush3.bf16.msra.mxu0 %v2367_v26  ;;  %v2384_v26 = vld [vmem:[#allocation9 + $0x40] ss:$8 sps:$4 sm:$0xff]  }
 0x3c5   :  { %2116 = vmatprep.subr.bf16.mxu0 %v2368_v54  ;;  %1864 = vmatpush1.bf16.msra.mxu1 %v2384_v26  ;;  %v2389_v54 = vld [vmem:[#allocation9 + $0x54] ss:$8 sps:$4 sm:$0xff]  }
 0x3c6   :  { %1865 = vmatprep.subr.bf16.mxu1 %v2389_v54 }
 0x3c8   :  { %2117 = vmatpush3.bf16.msra.mxu0 %v2369_v27  ;;  %v2387_v27 = vld [vmem:[#allocation9 + $0x50] ss:$8 sps:$4 sm:$0xff]  }
 0x3c9   :  { %2118 = vmatprep.subr.bf16.mxu0 %v2370_v28  ;;  %1866 = vmatpush1.bf16.msra.mxu1 %v2387_v27  ;;  %v2392_v28 = vld [vmem:[#allocation9 + $0x64] ss:$8 sps:$4 sm:$0xff]  }
 0x3ca   :  { %1867 = vmatprep.subr.bf16.mxu1 %v2392_v28 }
 0x3cc   :  { %2119 = vmatpush3.bf16.msra.mxu0 %v2371_v29  ;;  %v2390_v29 = vld [vmem:[#allocation9 + $0x60] ss:$8 sps:$4 sm:$0xff]  }
 0x3cd   :  { %1868 = vmatpush1.bf16.msra.mxu1 %v2390_v29 }
 0x3ce   :  { %1869 = vmatprep.subr.bf16.mxu1 %v2395_v30 }
 0x46a   :  { %v1229_v34 = vpop.f32.mrb[20].mxu0 }
 0x46b   :  { %v2218_v35 = vpop.f32.mrb[21].mxu0 }
 0x46c   :  { %v1232_v36 = vpop.f32.mrb[22].mxu0 }
 0x46d   :  { %v2219_v37 = vpop.f32.mrb[23].mxu0 }
 0x46e   :  { %v1272_v38 = vpop.f32.mrb[24].mxu1 }
 0x46f   :  { %v1544_v39 = vrot.slane %v1272_v38, 7  ;;  %v2224_v40 = vpop.f32.mrb[25].mxu1 }
 0x470   :  { %v1275_v41 = vpop.f32.mrb[26].mxu1 }
 0x471   :  { %v1546_v42 = vsel %vm1545_vm3, %v1544_v39, %v1229_v34  ;;  %v2225_v44 = vpop.f32.mrb[27].mxu1  ;;  %v1763_v41 = vld [vmem:[%s2940_s8] sm:$0x3]  ;;  %s1935_s8 = sshll.u32 %s2553_s6, 4  ;;  %s1936_s8 = int_to_ptr.vmem [resolvable:$true] %s1935_s8 }
 0x472   :  { %v1315_v45 = vpop.f32.mrb[24].mxu0  ;;  %v1772_v44 = vrot.slane %v1763_v41, %v2777_v2  ;;  %s2512_s0 = scalar_lea.vmem %s1936_s8, 256  ;;  %p2517_p11 = scmp.lt.s32.totalorder %s1936_s8, %s1936_s8 }
 0x473   :  { %v1547_v46 = vrot.slane %v1315_v45, 6  ;;  %v2230_v47 = vpop.f32.mrb[25].mxu0  ;;  %p2513_p10 = scmp.ne.s32.totalorder %s1936_s8, %s2512_s0  ;;  %p2518_p12 = scmp.lt.s32.totalorder %s2512_s0, %s2512_s0 }
 0x474   :  { %v1318_v49 = vpop.f32.mrb[26].mxu0 }
 0x475   :  { %v1549_v50 = vsel %vm1548_vm4, %v1547_v46, %v1546_v42  ;;  %v2231_v51 = vpop.f32.mrb[27].mxu0  ;;  %v1768_v42 = vrot.slane %v1763_v41, %v2769_v61  ;;  %p2519_p13 = por %p2518_p12, %p2517_p11 }
 0x476   :  { %v1358_v52 = vpop.f32.mrb[28].mxu1 }
 0x477   :  { %v1550_v56 = vrot.slane %v1358_v52, 5  ;;  %v2236_v57 = vpop.f32.mrb[29].mxu1  ;;  %p2520_p0 = pnand %p2519_p13, %p2513_p10 }
 0x478   :  { %v1361_v58 = vpop.f32.mrb[30].mxu1 }
 0x479   :  { %v1552_v59 = vsel %vm1551_vm5, %v1550_v56, %v1549_v50  ;;  %v2237_v60 = vpop.f32.mrb[31].mxu1 }
 0x47a   :  { %v1401_v63 = vpop.f32.mrb[28].mxu0 }
 0x47b   :  { %v1553_v4 = vrot.slane %v1401_v63, 4  ;;  %v2242_v48 = vpop.f32.mrb[29].mxu0 }
 0x47c   :  { %v1404_v5 = vpop.f32.mrb[30].mxu0 }
 0x47d   :  { %v1555_v6 = vsel %vm1554_vm6, %v1553_v4, %v1552_v59  ;;  %v2243_v7 = vpop.f32.mrb[31].mxu0 }
 0x47e   :  { %v1444_v8 = vpop.f32.mrb[32].mxu1 }
 0x47f   :  { %v1556_v55 = vrot.slane %v1444_v8, 3  ;;  %v2248_v10 = vpop.f32.mrb[33].mxu1 }
 0x480   :  { %v1447_v12 = vpop.f32.mrb[34].mxu1 }
 0x481   :  { %v1558_v13 = vsel %vm1557_vm7, %v1556_v55, %v1555_v6  ;;  %v2249_v62 = vpop.f32.mrb[35].mxu1 }
 0x482   :  { %v1487_v14 = vpop.f32.mrb[32].mxu0 }
 0x483   :  { %v1559_v15 = vrot.slane %v1487_v14, 2  ;;  %v2254_v16 = vpop.f32.mrb[33].mxu0 }
 0x484   :  { %v1490_v3 = vpop.f32.mrb[34].mxu0 }
 0x485   :  { %v1561_v17 = vsel %vm1560_vm8, %v1559_v15, %v1558_v13  ;;  %v2255_v19 = vpop.f32.mrb[35].mxu0 }
 0x486   :  { %v1530_v9 = vpop.f32.mrb[36].mxu1 }
 0x487   :  { %v1562_v20 = vrot.slane %v1530_v9, 1  ;;  %v2260_v53 = vpop.f32.mrb[37].mxu1 }
 0x488   :  { %v1533_v18 = vpop.f32.mrb[38].mxu1 }
 0x489   :  { %v2261_v22 = vpop.f32.mrb[39].mxu1  ;;  %v1564_v11 = vsel %vm1563_vm9, %v1562_v20, %v1561_v17 }
 0x48a   :  { %v1566_v0 = vpack.c.bf16 %v1564_v11, %v1564_v11 }
 0x48c   :  { %1734 = vmatprep.mubr.bf16.mxu0 %v1566_v0 }
 0x48d   :  { %1735 = vmatmul.mubr.bf16.vlgmr.msra.gmra.mrb[36].mxu0 %v2787_v43  ;;  %v2393_v43 = vld [vmem:[#allocation9 + $0x70] ss:$8 sps:$4 sm:$0xff]  }
 0x48e   :  { %1870 = vmatpush1.bf16.msra.mxu1 %v2393_v43 }
 0x560   :  { %v2120_v31 = vpop.f32.mrb[36].mxu0 }
 0x561   :  { %v2121_v33 = vpop.f32.mrb[37].mxu0 }
 0x562   :  { %v2122_v34 = vadd.f32 %v2121_v33, %v2120_v31  ;;  %v2123_v35 = vpop.f32.mrb[38].mxu0 }
 0x563   :  { %v2124_v36 = vpop.f32.mrb[39].mxu0 }
 0x564   :  { %v1737_v37 = vadd.f32 %v2122_v34, %v2021_v32 }
 0x566   :  { %2438 = vtanh.f32 %v1737_v37 }
 0x570   :  { %v2439_v38 = vpop.eup %2438 }
 0x571   :  { %v1743_v39 = vpack.c.bf16 %v2439_v38, %v2439_v38 }
 0x573   :  { %1744 = vst [vmem:[#allocation3] sm:$0xf] %v1743_v39 }
 0x57a   :  { %v1746_v40 = vld [vmem:[#allocation3] sm:$0xf] }
 0x57b   :  { %1888 = vmatmul.mubr.bf16.vlgmr.msra.gmra.mrb[40].mxu1 %v1746_v40 }
 0x64e   :  { %v1889_v45 = vpop.f32.mrb[40].mxu1 }
 0x64f   :  { %v1890_v46 = vadd.f32 %v1889_v45, %v1768_v42  ;;  %v1891_v47 = vpop.f32.mrb[41].mxu1 }
 0x650   :  { %v1892_v49 = vadd.f32 %v1891_v47, %v1772_v44  ;;  %v1893_v50 = vpop.f32.mrb[42].mxu1 }
 0x651   :  { %v1894_v51 = vpop.f32.mrb[43].mxu1 }
 0x652   :  { %v1908_v52 = vmax.f32 %v1890_v46, %v1892_v49 }
 0x654   :  { %1909 = vmax.xlane.f32.xlu0 %v1908_v52 }
 0x6e1   :  { %v1910_v56 = vpop.xlane.xlu0 %1909 }
 0x6e2   :  { %v1911_v57 = vsub.f32 %v1890_v46, %v1910_v56  ;;  %v1912_v58 = vsub.f32 %v1892_v49, %v1910_v56 }
 0x6e4   :  { %v1913_v59 = vmul.f32 1.442695, %v1911_v57  ;;  %v1915_v60 = vmul.f32 1.442695, %v1912_v58 }
 0x6e6   :  { %2440 = vpow2.f32 %v1913_v59 }
 0x6e7   :  { %2442 = vpow2.f32 %v1915_v60 }
 0x6f0   :  { %v2441_v63 = vpop.eup %2440 }
 0x6f1   :  { %v2443_v4 = vpop.eup %2442 }
 0x6f2   :  { %v1917_v61 = vadd.f32 %v2443_v4, %v2441_v63 }
 0x6f4   :  { %1918 = vadd.xlane.f32.xlu1 %v1917_v61 }
 0x781   :  { %v1919_v2 = vpop.xlane.xlu1 %1918 }
 0x782   :  { %2444 = vrcp.f32 %v1919_v2 }
 0x78c   :  { %v2445_v48 = vpop.eup %2444 }
 0x78d   :  { %v1921_v5 = vmul.f32 %v2445_v48, %v2441_v63  ;;  %v1922_v6 = vmul.f32 %v2445_v48, %v2443_v4 }
 0x78f   :  { %1923 = vst [vmem:[#allocation10] sm:$0xff] %v1921_v5  ;;  %1924 = vst [vmem:[#allocation10 + $0x8] sm:$0xff] %v1922_v6 }
 0x790   :  { %2523 = shalt.err (!%p2520_p0)
}
 0x791   :  { %s2524_s17 = scalar_lea.hbm %s2941_s9, 256 }
 0x792   :  { %p2525_p1 = scmp.ne.s32.totalorder %s2941_s9, %s2524_s17  ;;  %p2528_p2 = scmp.lt.u32.totalorder %s2524_s17, %s2941_s9 }
 0x794   :  { %p2530_p3 = pnand %p2528_p2, %p2525_p1 }
 0x796   :  { %2533 = shalt.err (!%p2530_p3)
}
 0x797   :  { %1938 = dma.vmem_to_hbm [thread:$0]  %s1936_s8, 256, %s2941_s9, [#allocation6]  }
 0x798   :  { %2538 = dma.done.wait [#allocation6], 256  }
 0x799   :  { %2539 = vsyncadd [#allocation6], 4294967040 }
 0x79a   :  { %1946 = vsyncpa [#allocation5], 1 }
 0x79b   :  { %1947 = vsyncpa [#allocation8], 1 }
 0x79c   :  { %1948 = vsyncpa [#allocation6], 1 }

</bundles_post_ra>
